<compile_context>
chip_gen: v6e
topology: v6e:2x2x1
jax: 0.10.0
libtpu: 0.0.40
codegen_flags: <defaults>
</compile_context>

<pallas_src>
import functools
import math

import jax
import jax.numpy as jnp
from jax import lax
from jax.experimental import pallas as pl
from jax.experimental.pallas import tpu as pltpu


_VMEM_LIMIT = 48 * 1024 * 1024   # explicit scoped-VMEM budget (v5e default: 16 MiB)


# ----------------------------------------------------------------------------
# Tile-size helpers (respect the (8, 128) block constraint)
# ----------------------------------------------------------------------------
def _tile_sublane(dim, target):
    """Largest multiple-of-8 tile <= target dividing dim, else the full dim."""
    if dim <= target:
        return dim
    t = (target // 8) * 8
    while t >= 8:
        if dim % t == 0:
            return t
        t -= 8
    return dim


def _tile_lane(dim, target):
    """Largest multiple-of-128 tile <= target dividing dim, else the full dim."""
    if dim <= target:
        return dim
    t = (target // 128) * 128
    while t >= 128:
        if dim % t == 0:
            return t
        t -= 128
    return dim


def _heads_per_group(n_head, d_head):
    """Smallest head-group size whose packed qkv slab width (3*G*Dh) is a
    multiple of 128 lanes (then G*Dh is too); fall back to all heads (full-dim
    blocks are always legal)."""
    for g in range(1, n_head + 1):
        if n_head % g == 0 and (3 * g * d_head) % 128 == 0:
            return g
    return n_head


# ----------------------------------------------------------------------------
# Tiled matmul with fused bias (+ optional residual add), f32 accumulator
# ----------------------------------------------------------------------------
def _make_linear_kernel(has_residual):
    def kernel(x_ref, w_ref, b_ref, *rest):
        if has_residual:
            res_ref, o_ref, acc_ref = rest
        else:
            o_ref, acc_ref = rest

        k_idx = pl.program_id(2)

        @pl.when(k_idx == 0)
        def _():
            acc_ref[...] = jnp.zeros_like(acc_ref)

        # Cast activations in-kernel to the (pre-converted) weight dtype;
        # f32 accumulation on the MXU.
        acc_ref[...] += jnp.dot(x_ref[...].astype(w_ref.dtype), w_ref[...],
                                preferred_element_type=jnp.float32)

        @pl.when(k_idx == pl.num_programs(2) - 1)
        def _():
            y = acc_ref[...] + b_ref[...]
            if has_residual:
                y = y + res_ref[...]
            o_ref[...] = y.astype(o_ref.dtype)

    return kernel


def linear(x, w, b, residual=None, *, out_dtype=jnp.float32,
           tm_target=1024, tn_target=256, tk_target=512):
    """out = x @ w + b (+ residual).  w is stored bf16 at init; x cast in-kernel."""
    M, K = x.shape
    N = w.shape[1]
    tm = _tile_sublane(M, tm_target)
    tn = _tile_lane(N, tn_target)
    tk = _tile_lane(K, tk_target)

    has_res = residual is not None
    kernel = _make_linear_kernel(has_res)

    in_specs = [
        pl.BlockSpec((tm, tk), lambda i, j, k: (i, k)),
        pl.BlockSpec((tk, tn), lambda i, j, k: (k, j)),
        pl.BlockSpec((1, tn), lambda i, j, k: (0, j)),
    ]
    args = [x, w, b.reshape(1, N)]
    if has_res:
        in_specs.append(pl.BlockSpec((tm, tn), lambda i, j, k: (i, j)))
        args.append(residual)

    return pl.pallas_call(
        kernel,
        out_shape=jax.ShapeDtypeStruct((M, N), out_dtype),
        grid=(M // tm, N // tn, K // tk),
        in_specs=in_specs,
        out_specs=pl.BlockSpec((tm, tn), lambda i, j, k: (i, j)),
        scratch_shapes=[pltpu.VMEM((tm, tn), jnp.float32)],
        compiler_params=pltpu.CompilerParams(
            dimension_semantics=("parallel", "parallel", "arbitrary"),
            vmem_limit_bytes=_VMEM_LIMIT),
    )(*args)


# ----------------------------------------------------------------------------
# LayerNorm fused into the following projection.  LN stats are computed once
# per row-tile (j==0) and the normalized rows cached in a bf16 VMEM scratch.
# ----------------------------------------------------------------------------
def _ln_linear_kernel(x_ref, g_ref, bln_ref, w_ref, b_ref, o_ref, xn_ref, *,
                      eps, activation):
    @pl.when(pl.program_id(1) == 0)
    def _():
        x = x_ref[...].astype(jnp.float32)                   # (tm, K)
        mean = jnp.mean(x, axis=-1, keepdims=True)
        xc = x - mean
        var = jnp.mean(xc * xc, axis=-1, keepdims=True)
        xn = xc * lax.rsqrt(var + eps) * g_ref[...] + bln_ref[...]
        xn_ref[...] = xn.astype(xn_ref.dtype)                # cache for all j

    y = jnp.dot(xn_ref[...], w_ref[...],
                preferred_element_type=jnp.float32) + b_ref[...]
    if activation == "gelu_new":
        # GPT-2 tanh-approximate GELU (f32; tanh is an EUP op).
        y = 0.5 * y * (1.0 + jnp.tanh(
            math.sqrt(2.0 / math.pi) * (y + 0.044715 * y * y * y)))
    o_ref[...] = y.astype(o_ref.dtype)


def ln_linear(x, gamma, beta, w, b, activation=None, *,
              eps=1e-5, tm_target=1024, tn_target=512):
    """out = act(LayerNorm(x) @ w + b), emitted in bf16 (feeds bf16 MXU users).
    K (=hidden) kept whole per row tile so the statistics are exact."""
    M, K = x.shape
    N = w.shape[1]
    tm = _tile_sublane(M, tm_target)
    tn = _tile_lane(N, tn_target)

    kernel = functools.partial(_ln_linear_kernel, eps=eps, activation=activation)
    return pl.pallas_call(
        kernel,
        out_shape=jax.ShapeDtypeStruct((M, N), jnp.bfloat16),
        grid=(M // tm, N // tn),
        in_specs=[
            pl.BlockSpec((tm, K), lambda i, j: (i, 0)),
            pl.BlockSpec((1, K), lambda i, j: (0, 0)),
            pl.BlockSpec((1, K), lambda i, j: (0, 0)),
            pl.BlockSpec((K, tn), lambda i, j: (0, j)),
            pl.BlockSpec((1, tn), lambda i, j: (0, j)),
        ],
        out_specs=pl.BlockSpec((tm, tn), lambda i, j: (i, j)),
        scratch_shapes=[pltpu.VMEM((tm, K), jnp.bfloat16)],
        # j must be sequential (LN cache is written at j==0); i is parallel.
        compiler_params=pltpu.CompilerParams(
            dimension_semantics=("parallel", "arbitrary"),
            vmem_limit_bytes=_VMEM_LIMIT),
    )(x, gamma.reshape(1, K), beta.reshape(1, K), w, b.reshape(1, N))


# ----------------------------------------------------------------------------
# Standalone LayerNorm (final LN of GPT2Model), tiled over rows
# ----------------------------------------------------------------------------
def _layernorm_kernel(x_ref, g_ref, b_ref, o_ref, *, eps):
    x = x_ref[...].astype(jnp.float32)
    mean = jnp.mean(x, axis=-1, keepdims=True)
    xc = x - mean
    var = jnp.mean(xc * xc, axis=-1, keepdims=True)
    o_ref[...] = (xc * lax.rsqrt(var + eps) * g_ref[...]
                  + b_ref[...]).astype(o_ref.dtype)


def layernorm(x, gamma, beta, eps=1e-5, *, tm_target=1024):
    M, H = x.shape
    tm = _tile_sublane(M, tm_target)
    kernel = functools.partial(_layernorm_kernel, eps=eps)
    return pl.pallas_call(
        kernel,
        out_shape=jax.ShapeDtypeStruct((M, H), jnp.float32),
        grid=(M // tm,),
        in_specs=[
            pl.BlockSpec((tm, H), lambda i: (i, 0)),
            pl.BlockSpec((1, H), lambda i: (0, 0)),
            pl.BlockSpec((1, H), lambda i: (0, 0)),
        ],
        out_specs=pl.BlockSpec((tm, H), lambda i: (i, 0)),
        compiler_params=pltpu.CompilerParams(
            dimension_semantics=("parallel",),
            vmem_limit_bytes=_VMEM_LIMIT),
    )(x, gamma.reshape(1, H), beta.reshape(1, H))


# ----------------------------------------------------------------------------
# Causal self-attention.  grid = (batch, head_group); c_attn columns were
# permuted at init so group g's [q|k|v] slab is one contiguous, 128-aligned
# lane block.  The softmax scale is already folded into the q weights.
# ----------------------------------------------------------------------------
def _attn_kernel(qkv_ref, bias_ref, o_ref, *, heads_per_group, d_head):
    S = qkv_ref.shape[1]
    G, Dh = heads_per_group, d_head

    # causal + padding additive bias, computed once per grid step.
    pad_bias = bias_ref[0]                                    # (1, S) f32
    row = lax.broadcasted_iota(jnp.int32, (S, S), 0)
    col = lax.broadcasted_iota(jnp.int32, (S, S), 1)
    bias2d = jnp.where(col <= row, pad_bias, jnp.float32(-1e9))   # (S, S)

    # Static loop over the (small) group; each head's result is stored
    # straight into o_ref, so only one (S, S) score matrix is live at a time.
    for g in range(G):
        q = qkv_ref[0, :, pl.ds(g * Dh, Dh)]                  # (S, Dh) bf16
        k = qkv_ref[0, :, pl.ds((G + g) * Dh, Dh)]
        v = qkv_ref[0, :, pl.ds((2 * G + g) * Dh, Dh)]

        s = jnp.einsum("qd,kd->qk", q, k,
                       preferred_element_type=jnp.float32) + bias2d
        s = s - jnp.max(s, axis=-1, keepdims=True)
        p = jnp.exp(s)
        p = p * pl.reciprocal(jnp.sum(p, axis=-1, keepdims=True), approx=True)
        o_ref[0, :, pl.ds(g * Dh, Dh)] = jnp.dot(
            p.astype(jnp.bfloat16), v,
            preferred_element_type=jnp.float32).astype(o_ref.dtype)


def attention(qkv, pad_bias, *, n_head, d_head, heads_per_group):
    """qkv: (B, S, 3H) head-group-packed [q_g|k_g|v_g]*; pad_bias: (B, 1, S)."""
    B, S, threeH = qkv.shape
    G = heads_per_group
    n_groups = n_head // G
    wg = 3 * G * d_head                                       # per-group slab width
    kernel = functools.partial(_attn_kernel, heads_per_group=G, d_head=d_head)
    return pl.pallas_call(
        kernel,
        out_shape=jax.ShapeDtypeStruct((B, S, n_head * d_head), jnp.bfloat16),
        grid=(B, n_groups),
        in_specs=[
            pl.BlockSpec((1, S, wg), lambda b, g: (b, 0, g)),
            pl.BlockSpec((1, 1, S), lambda b, g: (b, 0, 0)),
        ],
        out_specs=pl.BlockSpec((1, S, G * d_head), lambda b, g: (b, 0, g)),
        compiler_params=pltpu.CompilerParams(
            dimension_semantics=("parallel", "parallel"),
            vmem_limit_bytes=_VMEM_LIMIT),
    )(qkv, pad_bias)


# ----------------------------------------------------------------------------
# Classifier head: logits = flat @ fc1_w^T + b, fc1_w stored (nc, S*H) in f32.
# Leading parallel split over K halves (megacore), large K tiles, partials
# summed outside (tiny (n_split, B, nc) tensor).
# ----------------------------------------------------------------------------
def classifier_head(flat, w_t, b, *, tk_target=32768, n_split=2):
    B, K = flat.shape
    nc = w_t.shape[0]
    if K % n_split != 0 or (K // n_split) < 128:
        n_split = 1
    Ks = K // n_split
    tk = _tile_lane(Ks, tk_target)
    steps = Ks // tk

    def kernel(x_ref, w_ref, o_ref, acc_ref):
        kk = pl.program_id(1)

        @pl.when(kk == 0)
        def _():
            acc_ref[...] = jnp.zeros_like(acc_ref)

        acc_ref[...] += lax.dot_general(
            x_ref[...], w_ref[...], (((1,), (1,)), ((), ())),
            preferred_element_type=jnp.float32)

        @pl.when(kk == pl.num_programs(1) - 1)
        def _():
            o_ref[0] = acc_ref[...]

    partial = pl.pallas_call(
        kernel,
        out_shape=jax.ShapeDtypeStruct((n_split, B, nc), jnp.float32),
        grid=(n_split, steps),
        in_specs=[
            pl.BlockSpec((B, tk), lambda s, k: (0, s * steps + k)),
            pl.BlockSpec((nc, tk), lambda s, k: (0, s * steps + k)),
        ],
        out_specs=pl.BlockSpec((1, B, nc), lambda s, k: (s, 0, 0)),
        scratch_shapes=[pltpu.VMEM((B, nc), jnp.float32)],
        compiler_params=pltpu.CompilerParams(
            dimension_semantics=("parallel", "arbitrary"),
            vmem_limit_bytes=_VMEM_LIMIT),
    )(flat, w_t)
    return jnp.sum(partial, axis=0) + b[None, :]


# ----------------------------------------------------------------------------
# Parameter init (synthetic, deterministic).  Weight transforms done ONCE here:
# bf16 conversion, c_attn head-group column packing, 1/sqrt(Dh) folded into q.
# ----------------------------------------------------------------------------
def _pack_c_attn(w, b, *, n_head, d_head, heads_per_group, scale):
    """Permute standard [q|k|v] (head-major) columns into head-group-major
    packing [q_g0|k_g0|v_g0 | q_g1|k_g1|v_g1 | ...] and fold the attention
    scale into the q columns.  Mathematically identical attention output."""
    H = n_head * d_head
    wq, wk, wv = w[:, :H] * scale, w[:, H:2 * H], w[:, 2 * H:]
    bq, bk, bv = b[:H] * scale, b[H:2 * H], b[2 * H:]
    G = heads_per_group
    cols_w, cols_b = [], []
    for h0 in range(0, n_head, G):
        sl = slice(h0 * d_head, (h0 + G) * d_head)
        cols_w += [wq[:, sl], wk[:, sl], wv[:, sl]]
        cols_b += [bq[sl], bk[sl], bv[sl]]
    return jnp.concatenate(cols_w, axis=1), jnp.concatenate(cols_b)


def init_params(key, *, vocab_size, max_seq_len, hidden, n_head, n_layer,
                num_classes):
    std = 0.02
    d_head = hidden // n_head
    G = _heads_per_group(n_head, d_head)
    scale = 1.0 / math.sqrt(d_head)

    k_emb, k_pos, k_fc, key = jax.random.split(key, 4)
    params = {
        "wte": jax.random.normal(k_emb, (vocab_size, hidden), jnp.float32) * std,
        "wpe": jax.random.normal(k_pos, (max_seq_len, hidden), jnp.float32) * std,
        "lnf_g": jnp.ones((hidden,), jnp.float32),
        "lnf_b": jnp.zeros((hidden,), jnp.float32),
        # nn.Linear(hidden * max_seq_len, num_classes); stored as (out, in)
        # (PyTorch-native layout) and kept in f32 for the huge-K contraction.
        "fc1_w": jax.random.normal(k_fc, (num_classes, hidden * max_seq_len),
                                   jnp.float32) * std,
        "fc1_b": jnp.zeros((num_classes,), jnp.float32),
        "blocks": [],
    }
    for _ in range(n_layer):
        k1, k2, k3, k4, key = jax.random.split(key, 5)
        c_attn_w = jax.random.normal(k1, (hidden, 3 * hidden), jnp.float32) * std
        c_attn_b = jnp.zeros((3 * hidden,), jnp.float32)
        c_attn_w, c_attn_b = _pack_c_attn(
            c_attn_w, c_attn_b, n_head=n_head, d_head=d_head,
            heads_per_group=G, scale=scale)
        params["blocks"].append({
            "ln1_g": jnp.ones((hidden,), jnp.float32),
            "ln1_b": jnp.zeros((hidden,), jnp.float32),
            "c_attn_w": c_attn_w.astype(jnp.bfloat16),
            "c_attn_b": c_attn_b,                                   # f32
            "c_proj_w": (jax.random.normal(k2, (hidden, hidden), jnp.float32)
                         * std).astype(jnp.bfloat16),
            "c_proj_b": jnp.zeros((hidden,), jnp.float32),
            "ln2_g": jnp.ones((hidden,), jnp.float32),
            "ln2_b": jnp.zeros((hidden,), jnp.float32),
            "mlp_fc_w": (jax.random.normal(k3, (hidden, 4 * hidden), jnp.float32)
                         * std).astype(jnp.bfloat16),
            "mlp_fc_b": jnp.zeros((4 * hidden,), jnp.float32),
            "mlp_proj_w": (jax.random.normal(k4, (4 * hidden, hidden), jnp.float32)
                           * std).astype(jnp.bfloat16),
            "mlp_proj_b": jnp.zeros((hidden,), jnp.float32),
        })
    return params


# ----------------------------------------------------------------------------
# Forward pass glue
# ----------------------------------------------------------------------------
def gpt2_classifier_forward(params, input_id, mask, *, n_head):
    B, S = input_id.shape
    H = params["wte"].shape[1]
    Dh = H // n_head
    G = _heads_per_group(n_head, Dh)
    # The classifier assumes S == max_seq_len (fc1 input dim = hidden * max_seq_len).
    assert S * H == params["fc1_w"].shape[1]

    # Embedding gather is glue (data-dependent gather) -> XLA; the rest is Pallas.
    h = jnp.take(params["wte"], input_id, axis=0) + params["wpe"][None, :S, :]
    pad_bias = ((1.0 - mask.astype(jnp.float32)) * jnp.float32(-1e9)).reshape(B, 1, S)

    x = h.reshape(B * S, H)                                   # f32 residual stream
    for blk in params["blocks"]:
        # --- attention sublayer: LN1 fused into the qkv projection (bf16 out) ---
        qkv = ln_linear(x, blk["ln1_g"], blk["ln1_b"],
                        blk["c_attn_w"], blk["c_attn_b"])     # (B*S, 3H) bf16
        a = attention(qkv.reshape(B, S, 3 * H), pad_bias,
                      n_head=n_head, d_head=Dh, heads_per_group=G)  # (B,S,H) bf16
        # c_proj with fused bias + residual add (f32 residual stream)
        x = linear(a.reshape(B * S, H), blk["c_proj_w"], blk["c_proj_b"],
                   residual=x)

        # --- MLP sublayer: LN2 + mlp_fc + gelu_new fused (bf16 out); proj+res ---
        m = ln_linear(x, blk["ln2_g"], blk["ln2_b"],
                      blk["mlp_fc_w"], blk["mlp_fc_b"], activation="gelu_new")
        x = linear(m, blk["mlp_proj_w"], blk["mlp_proj_b"], residual=x)

    # final LayerNorm of GPT2Model
    gpt_out = layernorm(x, params["lnf_g"], params["lnf_b"])  # (B*S, H) f32
    flat = gpt_out.reshape(B, S * H)

    # classifier head: fc1(gpt_out.view(batch, -1))
    return classifier_head(flat, params["fc1_w"], params["fc1_b"])


if __name__ == "__main__":
    # small config consistent with the module's forward
    BATCH = 2
    SEQ = 8           # max_seq_len
    HIDDEN = 32       # hidden_size
    N_HEAD = 2
    N_LAYER = 2
    VOCAB = 50
    NUM_CLASSES = 3

    key = jax.random.PRNGKey(0)
    k_params, k_ids = jax.random.split(key)

    params = init_params(
        k_params, vocab_size=VOCAB, max_seq_len=SEQ, hidden=HIDDEN,
        n_head=N_HEAD, n_layer=N_LAYER, num_classes=NUM_CLASSES)

    input_id = jax.random.randint(k_ids, (BATCH, SEQ), 0, VOCAB, dtype=jnp.int32)
    mask = jnp.ones((BATCH, SEQ), jnp.int32).at[1, -2:].set(0)   # some padding

    fwd = jax.jit(functools.partial(gpt2_classifier_forward, n_head=N_HEAD))
    logits = fwd(params, input_id, mask)
    jax.block_until_ready(logits)

    assert logits.shape == (BATCH, NUM_CLASSES)
    assert bool(jnp.all(jnp.isfinite(logits)))
    print("KERNEL_OK")
</pallas_src>

<mosaic_0001>
module attributes {stable_mosaic.version = 11 : i64} {
  func.func @_attn_kernel(%arg0: i32, %arg1: i32, %arg2: memref<1x8x96xbf16, #tpu.memory_space<vmem>>, %arg3: memref<1x1x8xf32, #tpu.memory_space<vmem>>, %arg4: memref<1x8x32xbf16, #tpu.memory_space<vmem>>) attributes {dimension_semantics = [#tpu.dimension_semantics<parallel>, #tpu.dimension_semantics<parallel>], iteration_bounds = array<i64: 2, 1>, scalar_prefetch = 0 : i64, scratch_operands = 0 : i64, tpu.core_type = #tpu.core_type<tc>, window_params = [{transform_indices = @transform_0, window_bounds = array<i64: 1, 8, 96>}, {transform_indices = @transform_1, window_bounds = array<i64: 1, 1, 8>}, {transform_indices = @transform_2, window_bounds = array<i64: 1, 8, 32>}]} {
    %c0 = arith.constant 0 : index
    %c0_0 = arith.constant 0 : index
    %c0_1 = arith.constant 0 : index
    %0 = vector.load %arg3[%c0, %c0_0, %c0_1] : memref<1x1x8xf32, #tpu.memory_space<vmem>>, vector<1x1x8xf32>
    %1 = vector.shape_cast %0 : vector<1x1x8xf32> to vector<1x8xf32>
    %2 = tpu.iota {dimensions = array<i32: 0>} : vector<8x8xi32>
    %3 = tpu.iota {dimensions = array<i32: 1>} : vector<8x8xi32>
    %4 = arith.cmpi sle, %3, %2 : vector<8x8xi32>
    %cst = arith.constant -1.000000e+09 : f32
    %5 = vector.shape_cast %1 : vector<1x8xf32> to vector<1x8xf32>
    %6 = vector.broadcast %5 : vector<1x8xf32> to vector<8x8xf32>
    %7 = vector.broadcast %cst : f32 to vector<8x8xf32>
    %8 = arith.select %4, %6, %7 : vector<8x8xi1>, vector<8x8xf32>
    %c0_2 = arith.constant 0 : index
    %c0_3 = arith.constant 0 : index
    %c0_4 = arith.constant 0 : index
    %9 = vector.load %arg2[%c0_2, %c0_3, %c0_4] : memref<1x8x96xbf16, #tpu.memory_space<vmem>>, vector<1x8x16xbf16>
    %10 = vector.shape_cast %9 : vector<1x8x16xbf16> to vector<8x16xbf16>
    %c0_5 = arith.constant 0 : index
    %c0_6 = arith.constant 0 : index
    %c32 = arith.constant 32 : index
    %11 = vector.load %arg2[%c0_5, %c0_6, %c32] : memref<1x8x96xbf16, #tpu.memory_space<vmem>>, vector<1x8x16xbf16>
    %12 = vector.shape_cast %11 : vector<1x8x16xbf16> to vector<8x16xbf16>
    %c0_7 = arith.constant 0 : index
    %c0_8 = arith.constant 0 : index
    %c64 = arith.constant 64 : index
    %13 = vector.load %arg2[%c0_7, %c0_8, %c64] : memref<1x8x96xbf16, #tpu.memory_space<vmem>>, vector<1x8x16xbf16>
    %14 = vector.shape_cast %13 : vector<1x8x16xbf16> to vector<8x16xbf16>
    "tpu.trace_start"() <{level = 10 : i32, message = "qd,kd->qk"}> : () -> ()
    %cst_9 = arith.constant dense<0.000000e+00> : vector<8x8xf32>
    %15 = tpu.matmul %10, %12, %cst_9 {dimension_numbers = #tpu.dot_dimension_numbers<[1], [1], [0], [0], [0, 0, 1, 0], [], []>} : vector<8x16xbf16>, vector<8x16xbf16>, vector<8x8xf32> -> vector<8x8xf32>
    "tpu.trace_stop"() : () -> ()
    %16 = arith.addf %15, %8 : vector<8x8xf32>
    %cst_10 = arith.constant dense<0xFF800000> : vector<8xf32>
    %17 = vector.multi_reduction <maximumf>, %16, %cst_10 [1] : vector<8x8xf32> to vector<8xf32>
    %18 = vector.shape_cast %17 : vector<8xf32> to vector<8x1xf32>
    %19 = vector.broadcast %18 : vector<8x1xf32> to vector<8x8xf32>
    %20 = arith.subf %16, %19 : vector<8x8xf32>
    %21 = math.exp %20 : vector<8x8xf32>
    %cst_11 = arith.constant dense<0.000000e+00> : vector<8xf32>
    %22 = vector.multi_reduction <add>, %21, %cst_11 [1] : vector<8x8xf32> to vector<8xf32>
    %23 = vector.shape_cast %22 : vector<8xf32> to vector<8x1xf32>
    %24 = tpu.reciprocal %23 {approx = true} : vector<8x1xf32> -> vector<8x1xf32>
    %25 = vector.broadcast %24 : vector<8x1xf32> to vector<8x8xf32>
    %26 = arith.mulf %21, %25 : vector<8x8xf32>
    %27 = arith.truncf %26 : vector<8x8xf32> to vector<8x8xbf16>
    %cst_12 = arith.constant dense<0.000000e+00> : vector<8x16xf32>
    %28 = tpu.matmul %27, %14, %cst_12 {dimension_numbers = #tpu.dot_dimension_numbers<[1], [0], [0], [1], [0, 0, 1, 1], [], []>} : vector<8x8xbf16>, vector<8x16xbf16>, vector<8x16xf32> -> vector<8x16xf32>
    %29 = arith.truncf %28 : vector<8x16xf32> to vector<8x16xbf16>
    %c0_13 = arith.constant 0 : index
    %c0_14 = arith.constant 0 : index
    %c0_15 = arith.constant 0 : index
    %30 = vector.load %arg4[%c0_13, %c0_14, %c0_15] : memref<1x8x32xbf16, #tpu.memory_space<vmem>>, vector<1x8x16xbf16>
    %31 = vector.shape_cast %30 : vector<1x8x16xbf16> to vector<8x16xbf16>
    %32 = vector.shape_cast %29 : vector<8x16xbf16> to vector<1x8x16xbf16>
    tpu.vector_store %arg4[%c0_13, %c0_14, %c0_15], %32 {strides = array<i32>} : memref<1x8x32xbf16, #tpu.memory_space<vmem>>, vector<1x8x16xbf16>,
    %c0_16 = arith.constant 0 : index
    %c0_17 = arith.constant 0 : index
    %c16 = arith.constant 16 : index
    %33 = vector.load %arg2[%c0_16, %c0_17, %c16] : memref<1x8x96xbf16, #tpu.memory_space<vmem>>, vector<1x8x16xbf16>
    %34 = vector.shape_cast %33 : vector<1x8x16xbf16> to vector<8x16xbf16>
    %c0_18 = arith.constant 0 : index
    %c0_19 = arith.constant 0 : index
    %c48 = arith.constant 48 : index
    %35 = vector.load %arg2[%c0_18, %c0_19, %c48] : memref<1x8x96xbf16, #tpu.memory_space<vmem>>, vector<1x8x16xbf16>
    %36 = vector.shape_cast %35 : vector<1x8x16xbf16> to vector<8x16xbf16>
    %c0_20 = arith.constant 0 : index
    %c0_21 = arith.constant 0 : index
    %c80 = arith.constant 80 : index
    %37 = vector.load %arg2[%c0_20, %c0_21, %c80] : memref<1x8x96xbf16, #tpu.memory_space<vmem>>, vector<1x8x16xbf16>
    %38 = vector.shape_cast %37 : vector<1x8x16xbf16> to vector<8x16xbf16>
    "tpu.trace_start"() <{level = 10 : i32, message = "qd,kd->qk"}> : () -> ()
    %cst_22 = arith.constant dense<0.000000e+00> : vector<8x8xf32>
    %39 = tpu.matmul %34, %36, %cst_22 {dimension_numbers = #tpu.dot_dimension_numbers<[1], [1], [0], [0], [0, 0, 1, 0], [], []>} : vector<8x16xbf16>, vector<8x16xbf16>, vector<8x8xf32> -> vector<8x8xf32>
    "tpu.trace_stop"() : () -> ()
    %40 = arith.addf %39, %8 : vector<8x8xf32>
    %cst_23 = arith.constant dense<0xFF800000> : vector<8xf32>
    %41 = vector.multi_reduction <maximumf>, %40, %cst_23 [1] : vector<8x8xf32> to vector<8xf32>
    %42 = vector.shape_cast %41 : vector<8xf32> to vector<8x1xf32>
    %43 = vector.broadcast %42 : vector<8x1xf32> to vector<8x8xf32>
    %44 = arith.subf %40, %43 : vector<8x8xf32>
    %45 = math.exp %44 : vector<8x8xf32>
    %cst_24 = arith.constant dense<0.000000e+00> : vector<8xf32>
    %46 = vector.multi_reduction <add>, %45, %cst_24 [1] : vector<8x8xf32> to vector<8xf32>
    %47 = vector.shape_cast %46 : vector<8xf32> to vector<8x1xf32>
    %48 = tpu.reciprocal %47 {approx = true} : vector<8x1xf32> -> vector<8x1xf32>
    %49 = vector.broadcast %48 : vector<8x1xf32> to vector<8x8xf32>
    %50 = arith.mulf %45, %49 : vector<8x8xf32>
    %51 = arith.truncf %50 : vector<8x8xf32> to vector<8x8xbf16>
    %cst_25 = arith.constant dense<0.000000e+00> : vector<8x16xf32>
    %52 = tpu.matmul %51, %38, %cst_25 {dimension_numbers = #tpu.dot_dimension_numbers<[1], [0], [0], [1], [0, 0, 1, 1], [], []>} : vector<8x8xbf16>, vector<8x16xbf16>, vector<8x16xf32> -> vector<8x16xf32>
    %53 = arith.truncf %52 : vector<8x16xf32> to vector<8x16xbf16>
    %c0_26 = arith.constant 0 : index
    %c0_27 = arith.constant 0 : index
    %c16_28 = arith.constant 16 : index
    %54 = vector.load %arg4[%c0_26, %c0_27, %c16_28] : memref<1x8x32xbf16, #tpu.memory_space<vmem>>, vector<1x8x16xbf16>
    %55 = vector.shape_cast %54 : vector<1x8x16xbf16> to vector<8x16xbf16>
    %56 = vector.shape_cast %53 : vector<8x16xbf16> to vector<1x8x16xbf16>
    tpu.vector_store %arg4[%c0_26, %c0_27, %c16_28], %56 {strides = array<i32>} : memref<1x8x32xbf16, #tpu.memory_space<vmem>>, vector<1x8x16xbf16>,
    return
  }
  func.func @transform_0(%arg0: i32, %arg1: i32) -> (i32, i32, i32) {
    %c0_i32 = arith.constant 0 : i32
    %c0_i32_0 = arith.constant 0 : i32
    return %arg0, %c0_i32, %arg1 : i32, i32, i32
  }
  func.func @transform_1(%arg0: i32, %arg1: i32) -> (i32, i32, i32) {
    %c0_i32 = arith.constant 0 : i32
    %c0_i32_0 = arith.constant 0 : i32
    %c0_i32_1 = arith.constant 0 : i32
    return %arg0, %c0_i32, %c0_i32_0 : i32, i32, i32
  }
  func.func @transform_2(%arg0: i32, %arg1: i32) -> (i32, i32, i32) {
    %c0_i32 = arith.constant 0 : i32
    %c0_i32_0 = arith.constant 0 : i32
    return %arg0, %c0_i32, %arg1 : i32, i32, i32
  }
}

module attributes {stable_mosaic.version = 11 : i64} {
  func.func @_ln_linear_kernel(%arg0: i32, %arg1: i32, %arg2: memref<16x32xf32, #tpu.memory_space<vmem>>, %arg3: memref<1x32xf32, #tpu.memory_space<vmem>>, %arg4: memref<1x32xf32, #tpu.memory_space<vmem>>, %arg5: memref<32x96xbf16, #tpu.memory_space<vmem>>, %arg6: memref<1x96xf32, #tpu.memory_space<vmem>>, %arg7: memref<16x96xbf16, #tpu.memory_space<vmem>>, %arg8: memref<16x32xbf16, #tpu.memory_space<vmem>>) attributes {dimension_semantics = [#tpu.dimension_semantics<parallel>, #tpu.dimension_semantics<arbitrary>], iteration_bounds = array<i64: 1, 1>, scalar_prefetch = 0 : i64, scratch_operands = 1 : i64, tpu.core_type = #tpu.core_type<tc>, window_params = [{transform_indices = @transform_0, window_bounds = array<i64: 16, 32>}, {pipeline_mode = #tpu.pipeline_mode<synchronous>, transform_indices = @transform_1, window_bounds = array<i64: 1, 32>}, {pipeline_mode = #tpu.pipeline_mode<synchronous>, transform_indices = @transform_2, window_bounds = array<i64: 1, 32>}, {transform_indices = @transform_3, window_bounds = array<i64: 32, 96>}, {transform_indices = @transform_4, window_bounds = array<i64: 1, 96>}, {transform_indices = @transform_5, window_bounds = array<i64: 16, 96>}]} {
    %c0_i32 = arith.constant 0 : i32
    %0 = arith.cmpi eq, %arg1, %c0_i32 : i32
    %1 = arith.extui %0 : i1 to i32
    %c0_i32_0 = arith.constant 0 : i32
    %2 = arith.cmpi ne, %1, %c0_i32_0 : i32
    scf.if %2 {
      %c0_8 = arith.constant 0 : index
      %c0_9 = arith.constant 0 : index
      %11 = vector.load %arg2[%c0_8, %c0_9] : memref<16x32xf32, #tpu.memory_space<vmem>>, vector<16x32xf32>
      %cst_10 = arith.constant dense<0.000000e+00> : vector<16xf32>
      %12 = vector.multi_reduction <add>, %11, %cst_10 [1] : vector<16x32xf32> to vector<16xf32>
      %13 = vector.shape_cast %12 : vector<16xf32> to vector<16x1xf32>
      %cst_11 = arith.constant 3.200000e+01 : f32
      %14 = vector.broadcast %cst_11 : f32 to vector<16x1xf32>
      %15 = arith.divf %13, %14 : vector<16x1xf32>
      %16 = vector.broadcast %15 : vector<16x1xf32> to vector<16x32xf32>
      %17 = arith.subf %11, %16 : vector<16x32xf32>
      %18 = arith.mulf %17, %17 : vector<16x32xf32>
      %cst_12 = arith.constant dense<0.000000e+00> : vector<16xf32>
      %19 = vector.multi_reduction <add>, %18, %cst_12 [1] : vector<16x32xf32> to vector<16xf32>
      %20 = vector.shape_cast %19 : vector<16xf32> to vector<16x1xf32>
      %cst_13 = arith.constant 3.200000e+01 : f32
      %21 = vector.broadcast %cst_13 : f32 to vector<16x1xf32>
      %22 = arith.divf %20, %21 : vector<16x1xf32>
      %cst_14 = arith.constant 9.99999974E-6 : f32
      %23 = vector.broadcast %cst_14 : f32 to vector<16x1xf32>
      %24 = arith.addf %22, %23 : vector<16x1xf32>
      %25 = math.rsqrt %24 : vector<16x1xf32>
      %26 = vector.broadcast %25 : vector<16x1xf32> to vector<16x32xf32>
      %27 = arith.mulf %17, %26 : vector<16x32xf32>
      %c0_15 = arith.constant 0 : index
      %c0_16 = arith.constant 0 : index
      %28 = vector.load %arg3[%c0_15, %c0_16] : memref<1x32xf32, #tpu.memory_space<vmem>>, vector<1x32xf32>
      %29 = vector.broadcast %28 : vector<1x32xf32> to vector<16x32xf32>
      %30 = arith.mulf %27, %29 : vector<16x32xf32>
      %c0_17 = arith.constant 0 : index
      %c0_18 = arith.constant 0 : index
      %31 = vector.load %arg4[%c0_17, %c0_18] : memref<1x32xf32, #tpu.memory_space<vmem>>, vector<1x32xf32>
      %32 = vector.broadcast %31 : vector<1x32xf32> to vector<16x32xf32>
      %33 = arith.addf %30, %32 : vector<16x32xf32>
      %34 = arith.truncf %33 : vector<16x32xf32> to vector<16x32xbf16>
      %c0_19 = arith.constant 0 : index
      %c0_20 = arith.constant 0 : index
      %35 = vector.load %arg8[%c0_19, %c0_20] : memref<16x32xbf16, #tpu.memory_space<vmem>>, vector<16x32xbf16>
      tpu.vector_store %arg8[%c0_19, %c0_20], %34 {strides = array<i32>} : memref<16x32xbf16, #tpu.memory_space<vmem>>, vector<16x32xbf16>,
    } else {
    }
    %c0 = arith.constant 0 : index
    %c0_1 = arith.constant 0 : index
    %3 = vector.load %arg8[%c0, %c0_1] : memref<16x32xbf16, #tpu.memory_space<vmem>>, vector<16x32xbf16>
    %c0_2 = arith.constant 0 : index
    %c0_3 = arith.constant 0 : index
    %4 = vector.load %arg5[%c0_2, %c0_3] : memref<32x96xbf16, #tpu.memory_space<vmem>>, vector<32x96xbf16>
    %cst = arith.constant dense<0.000000e+00> : vector<16x96xf32>
    %5 = tpu.matmul %3, %4, %cst {dimension_numbers = #tpu.dot_dimension_numbers<[1], [0], [0], [1], [0, 0, 1, 1], [], []>} : vector<16x32xbf16>, vector<32x96xbf16>, vector<16x96xf32> -> vector<16x96xf32>
    %c0_4 = arith.constant 0 : index
    %c0_5 = arith.constant 0 : index
    %6 = vector.load %arg6[%c0_4, %c0_5] : memref<1x96xf32, #tpu.memory_space<vmem>>, vector<1x96xf32>
    %7 = vector.broadcast %6 : vector<1x96xf32> to vector<16x96xf32>
    %8 = arith.addf %5, %7 : vector<16x96xf32>
    %9 = arith.truncf %8 : vector<16x96xf32> to vector<16x96xbf16>
    %c0_6 = arith.constant 0 : index
    %c0_7 = arith.constant 0 : index
    %10 = vector.load %arg7[%c0_6, %c0_7] : memref<16x96xbf16, #tpu.memory_space<vmem>>, vector<16x96xbf16>
    tpu.vector_store %arg7[%c0_6, %c0_7], %9 {strides = array<i32>} : memref<16x96xbf16, #tpu.memory_space<vmem>>, vector<16x96xbf16>,
    return
  }
  func.func @transform_0(%arg0: i32, %arg1: i32) -> (i32, i32) {
    %c0_i32 = arith.constant 0 : i32
    %c0_i32_0 = arith.constant 0 : i32
    return %arg0, %c0_i32 : i32, i32
  }
  func.func @transform_1(%arg0: i32, %arg1: i32) -> (i32, i32) {
    %c0_i32 = arith.constant 0 : i32
    %c0_i32_0 = arith.constant 0 : i32
    %c0_i32_1 = arith.constant 0 : i32
    return %c0_i32, %c0_i32_0 : i32, i32
  }
  func.func @transform_2(%arg0: i32, %arg1: i32) -> (i32, i32) {
    %c0_i32 = arith.constant 0 : i32
    %c0_i32_0 = arith.constant 0 : i32
    %c0_i32_1 = arith.constant 0 : i32
    return %c0_i32, %c0_i32_0 : i32, i32
  }
  func.func @transform_3(%arg0: i32, %arg1: i32) -> (i32, i32) {
    %c0_i32 = arith.constant 0 : i32
    %c0_i32_0 = arith.constant 0 : i32
    return %c0_i32, %arg1 : i32, i32
  }
  func.func @transform_4(%arg0: i32, %arg1: i32) -> (i32, i32) {
    %c0_i32 = arith.constant 0 : i32
    %c0_i32_0 = arith.constant 0 : i32
    return %c0_i32, %arg1 : i32, i32
  }
  func.func @transform_5(%arg0: i32, %arg1: i32) -> (i32, i32) {
    %c0_i32 = arith.constant 0 : i32
    return %arg0, %arg1 : i32, i32
  }
}

module attributes {stable_mosaic.version = 11 : i64} {
  func.func @kernel(%arg0: i32, %arg1: i32, %arg2: i32, %arg3: memref<16x32xbf16, #tpu.memory_space<vmem>>, %arg4: memref<32x32xbf16, #tpu.memory_space<vmem>>, %arg5: memref<1x32xf32, #tpu.memory_space<vmem>>, %arg6: memref<16x32xf32, #tpu.memory_space<vmem>>, %arg7: memref<16x32xf32, #tpu.memory_space<vmem>>, %arg8: memref<16x32xf32, #tpu.memory_space<vmem>>) attributes {dimension_semantics = [#tpu.dimension_semantics<parallel>, #tpu.dimension_semantics<parallel>, #tpu.dimension_semantics<arbitrary>], iteration_bounds = array<i64: 1, 1, 1>, scalar_prefetch = 0 : i64, scratch_operands = 1 : i64, tpu.core_type = #tpu.core_type<tc>, window_params = [{transform_indices = @transform_0, window_bounds = array<i64: 16, 32>}, {transform_indices = @transform_1, window_bounds = array<i64: 32, 32>}, {transform_indices = @transform_2, window_bounds = array<i64: 1, 32>}, {transform_indices = @transform_3, window_bounds = array<i64: 16, 32>}, {transform_indices = @transform_4, window_bounds = array<i64: 16, 32>}]} {
    %c0_i32 = arith.constant 0 : i32
    %0 = arith.cmpi eq, %arg2, %c0_i32 : i32
    %1 = arith.extui %0 : i1 to i32
    %c0_i32_0 = arith.constant 0 : i32
    %2 = arith.cmpi ne, %1, %c0_i32_0 : i32
    scf.if %2 {
      %cst_10 = arith.constant 0.000000e+00 : f32
      %12 = vector.broadcast %cst_10 : f32 to vector<16x32xf32>
      %c0_11 = arith.constant 0 : index
      %c0_12 = arith.constant 0 : index
      %13 = vector.load %arg8[%c0_11, %c0_12] : memref<16x32xf32, #tpu.memory_space<vmem>>, vector<16x32xf32>
      tpu.vector_store %arg8[%c0_11, %c0_12], %12 {strides = array<i32>} : memref<16x32xf32, #tpu.memory_space<vmem>>, vector<16x32xf32>,
    } else {
    }
    %c0 = arith.constant 0 : index
    %c0_1 = arith.constant 0 : index
    %3 = vector.load %arg8[%c0, %c0_1] : memref<16x32xf32, #tpu.memory_space<vmem>>, vector<16x32xf32>
    %c0_2 = arith.constant 0 : index
    %c0_3 = arith.constant 0 : index
    %4 = vector.load %arg3[%c0_2, %c0_3] : memref<16x32xbf16, #tpu.memory_space<vmem>>, vector<16x32xbf16>
    %c0_4 = arith.constant 0 : index
    %c0_5 = arith.constant 0 : index
    %5 = vector.load %arg4[%c0_4, %c0_5] : memref<32x32xbf16, #tpu.memory_space<vmem>>, vector<32x32xbf16>
    %cst = arith.constant dense<0.000000e+00> : vector<16x32xf32>
    %6 = tpu.matmul %4, %5, %cst {dimension_numbers = #tpu.dot_dimension_numbers<[1], [0], [0], [1], [0, 0, 1, 1], [], []>} : vector<16x32xbf16>, vector<32x32xbf16>, vector<16x32xf32> -> vector<16x32xf32>
    %7 = arith.addf %3, %6 : vector<16x32xf32>
    %c0_6 = arith.constant 0 : index
    %c0_7 = arith.constant 0 : index
    %8 = vector.load %arg8[%c0_6, %c0_7] : memref<16x32xf32, #tpu.memory_space<vmem>>, vector<16x32xf32>
    tpu.vector_store %arg8[%c0_6, %c0_7], %7 {strides = array<i32>} : memref<16x32xf32, #tpu.memory_space<vmem>>, vector<16x32xf32>,
    %c0_i32_8 = arith.constant 0 : i32
    %9 = arith.cmpi eq, %arg2, %c0_i32_8 : i32
    %10 = arith.extui %9 : i1 to i32
    %c0_i32_9 = arith.constant 0 : i32
    %11 = arith.cmpi ne, %10, %c0_i32_9 : i32
    scf.if %11 {
      %c0_10 = arith.constant 0 : index
      %c0_11 = arith.constant 0 : index
      %12 = vector.load %arg8[%c0_10, %c0_11] : memref<16x32xf32, #tpu.memory_space<vmem>>, vector<16x32xf32>
      %c0_12 = arith.constant 0 : index
      %c0_13 = arith.constant 0 : index
      %13 = vector.load %arg5[%c0_12, %c0_13] : memref<1x32xf32, #tpu.memory_space<vmem>>, vector<1x32xf32>
      %14 = vector.broadcast %13 : vector<1x32xf32> to vector<16x32xf32>
      %15 = arith.addf %12, %14 : vector<16x32xf32>
      %c0_14 = arith.constant 0 : index
      %c0_15 = arith.constant 0 : index
      %16 = vector.load %arg6[%c0_14, %c0_15] : memref<16x32xf32, #tpu.memory_space<vmem>>, vector<16x32xf32>
      %17 = arith.addf %15, %16 : vector<16x32xf32>
      %c0_16 = arith.constant 0 : index
      %c0_17 = arith.constant 0 : index
      %18 = vector.load %arg7[%c0_16, %c0_17] : memref<16x32xf32, #tpu.memory_space<vmem>>, vector<16x32xf32>
      tpu.vector_store %arg7[%c0_16, %c0_17], %17 {strides = array<i32>} : memref<16x32xf32, #tpu.memory_space<vmem>>, vector<16x32xf32>,
    } else {
    }
    return
  }
  func.func @transform_0(%arg0: i32, %arg1: i32, %arg2: i32) -> (i32, i32) {
    %c0_i32 = arith.constant 0 : i32
    return %arg0, %arg2 : i32, i32
  }
  func.func @transform_1(%arg0: i32, %arg1: i32, %arg2: i32) -> (i32, i32) {
    %c0_i32 = arith.constant 0 : i32
    return %arg2, %arg1 : i32, i32
  }
  func.func @transform_2(%arg0: i32, %arg1: i32, %arg2: i32) -> (i32, i32) {
    %c0_i32 = arith.constant 0 : i32
    %c0_i32_0 = arith.constant 0 : i32
    return %c0_i32, %arg1 : i32, i32
  }
  func.func @transform_3(%arg0: i32, %arg1: i32, %arg2: i32) -> (i32, i32) {
    %c0_i32 = arith.constant 0 : i32
    return %arg0, %arg1 : i32, i32
  }
  func.func @transform_4(%arg0: i32, %arg1: i32, %arg2: i32) -> (i32, i32) {
    %c0_i32 = arith.constant 0 : i32
    return %arg0, %arg1 : i32, i32
  }
}

module attributes {stable_mosaic.version = 11 : i64} {
  func.func @_ln_linear_kernel(%arg0: i32, %arg1: i32, %arg2: memref<16x32xf32, #tpu.memory_space<vmem>>, %arg3: memref<1x32xf32, #tpu.memory_space<vmem>>, %arg4: memref<1x32xf32, #tpu.memory_space<vmem>>, %arg5: memref<32x128xbf16, #tpu.memory_space<vmem>>, %arg6: memref<1x128xf32, #tpu.memory_space<vmem>>, %arg7: memref<16x128xbf16, #tpu.memory_space<vmem>>, %arg8: memref<16x32xbf16, #tpu.memory_space<vmem>>) attributes {dimension_semantics = [#tpu.dimension_semantics<parallel>, #tpu.dimension_semantics<arbitrary>], iteration_bounds = array<i64: 1, 1>, scalar_prefetch = 0 : i64, scratch_operands = 1 : i64, tpu.core_type = #tpu.core_type<tc>, window_params = [{transform_indices = @transform_0, window_bounds = array<i64: 16, 32>}, {pipeline_mode = #tpu.pipeline_mode<synchronous>, transform_indices = @transform_1, window_bounds = array<i64: 1, 32>}, {pipeline_mode = #tpu.pipeline_mode<synchronous>, transform_indices = @transform_2, window_bounds = array<i64: 1, 32>}, {transform_indices = @transform_3, window_bounds = array<i64: 32, 128>}, {transform_indices = @transform_4, window_bounds = array<i64: 1, 128>}, {transform_indices = @transform_5, window_bounds = array<i64: 16, 128>}]} {
    %c0_i32 = arith.constant 0 : i32
    %0 = arith.cmpi eq, %arg1, %c0_i32 : i32
    %1 = arith.extui %0 : i1 to i32
    %c0_i32_0 = arith.constant 0 : i32
    %2 = arith.cmpi ne, %1, %c0_i32_0 : i32
    scf.if %2 {
      %c0_12 = arith.constant 0 : index
      %c0_13 = arith.constant 0 : index
      %24 = vector.load %arg2[%c0_12, %c0_13] : memref<16x32xf32, #tpu.memory_space<vmem>>, vector<16x32xf32>
      %cst_14 = arith.constant dense<0.000000e+00> : vector<16xf32>
      %25 = vector.multi_reduction <add>, %24, %cst_14 [1] : vector<16x32xf32> to vector<16xf32>
      %26 = vector.shape_cast %25 : vector<16xf32> to vector<16x1xf32>
      %cst_15 = arith.constant 3.200000e+01 : f32
      %27 = vector.broadcast %cst_15 : f32 to vector<16x1xf32>
      %28 = arith.divf %26, %27 : vector<16x1xf32>
      %29 = vector.broadcast %28 : vector<16x1xf32> to vector<16x32xf32>
      %30 = arith.subf %24, %29 : vector<16x32xf32>
      %31 = arith.mulf %30, %30 : vector<16x32xf32>
      %cst_16 = arith.constant dense<0.000000e+00> : vector<16xf32>
      %32 = vector.multi_reduction <add>, %31, %cst_16 [1] : vector<16x32xf32> to vector<16xf32>
      %33 = vector.shape_cast %32 : vector<16xf32> to vector<16x1xf32>
      %cst_17 = arith.constant 3.200000e+01 : f32
      %34 = vector.broadcast %cst_17 : f32 to vector<16x1xf32>
      %35 = arith.divf %33, %34 : vector<16x1xf32>
      %cst_18 = arith.constant 9.99999974E-6 : f32
      %36 = vector.broadcast %cst_18 : f32 to vector<16x1xf32>
      %37 = arith.addf %35, %36 : vector<16x1xf32>
      %38 = math.rsqrt %37 : vector<16x1xf32>
      %39 = vector.broadcast %38 : vector<16x1xf32> to vector<16x32xf32>
      %40 = arith.mulf %30, %39 : vector<16x32xf32>
      %c0_19 = arith.constant 0 : index
      %c0_20 = arith.constant 0 : index
      %41 = vector.load %arg3[%c0_19, %c0_20] : memref<1x32xf32, #tpu.memory_space<vmem>>, vector<1x32xf32>
      %42 = vector.broadcast %41 : vector<1x32xf32> to vector<16x32xf32>
      %43 = arith.mulf %40, %42 : vector<16x32xf32>
      %c0_21 = arith.constant 0 : index
      %c0_22 = arith.constant 0 : index
      %44 = vector.load %arg4[%c0_21, %c0_22] : memref<1x32xf32, #tpu.memory_space<vmem>>, vector<1x32xf32>
      %45 = vector.broadcast %44 : vector<1x32xf32> to vector<16x32xf32>
      %46 = arith.addf %43, %45 : vector<16x32xf32>
      %47 = arith.truncf %46 : vector<16x32xf32> to vector<16x32xbf16>
      %c0_23 = arith.constant 0 : index
      %c0_24 = arith.constant 0 : index
      %48 = vector.load %arg8[%c0_23, %c0_24] : memref<16x32xbf16, #tpu.memory_space<vmem>>, vector<16x32xbf16>
      tpu.vector_store %arg8[%c0_23, %c0_24], %47 {strides = array<i32>} : memref<16x32xbf16, #tpu.memory_space<vmem>>, vector<16x32xbf16>,
    } else {
    }
    %c0 = arith.constant 0 : index
    %c0_1 = arith.constant 0 : index
    %3 = vector.load %arg8[%c0, %c0_1] : memref<16x32xbf16, #tpu.memory_space<vmem>>, vector<16x32xbf16>
    %c0_2 = arith.constant 0 : index
    %c0_3 = arith.constant 0 : index
    %4 = vector.load %arg5[%c0_2, %c0_3] : memref<32x128xbf16, #tpu.memory_space<vmem>>, vector<32x128xbf16>
    %cst = arith.constant dense<0.000000e+00> : vector<16x128xf32>
    %5 = tpu.matmul %3, %4, %cst {dimension_numbers = #tpu.dot_dimension_numbers<[1], [0], [0], [1], [0, 0, 1, 1], [], []>} : vector<16x32xbf16>, vector<32x128xbf16>, vector<16x128xf32> -> vector<16x128xf32>
    %c0_4 = arith.constant 0 : index
    %c0_5 = arith.constant 0 : index
    %6 = vector.load %arg6[%c0_4, %c0_5] : memref<1x128xf32, #tpu.memory_space<vmem>>, vector<1x128xf32>
    %7 = vector.broadcast %6 : vector<1x128xf32> to vector<16x128xf32>
    %8 = arith.addf %5, %7 : vector<16x128xf32>
    %cst_6 = arith.constant 5.000000e-01 : f32
    %9 = vector.broadcast %cst_6 : f32 to vector<16x128xf32>
    %10 = arith.mulf %9, %8 : vector<16x128xf32>
    %cst_7 = arith.constant 4.471500e-02 : f32
    %11 = vector.broadcast %cst_7 : f32 to vector<16x128xf32>
    %12 = arith.mulf %11, %8 : vector<16x128xf32>
    %13 = arith.mulf %12, %8 : vector<16x128xf32>
    %14 = arith.mulf %13, %8 : vector<16x128xf32>
    %15 = arith.addf %8, %14 : vector<16x128xf32>
    %cst_8 = arith.constant 0.797884583 : f32
    %16 = vector.broadcast %cst_8 : f32 to vector<16x128xf32>
    %17 = arith.mulf %16, %15 : vector<16x128xf32>
    %18 = math.tanh %17 : vector<16x128xf32>
    %cst_9 = arith.constant 1.000000e+00 : f32
    %19 = vector.broadcast %cst_9 : f32 to vector<16x128xf32>
    %20 = arith.addf %19, %18 : vector<16x128xf32>
    %21 = arith.mulf %10, %20 : vector<16x128xf32>
    %22 = arith.truncf %21 : vector<16x128xf32> to vector<16x128xbf16>
    %c0_10 = arith.constant 0 : index
    %c0_11 = arith.constant 0 : index
    %23 = vector.load %arg7[%c0_10, %c0_11] : memref<16x128xbf16, #tpu.memory_space<vmem>>, vector<16x128xbf16>
    tpu.vector_store %arg7[%c0_10, %c0_11], %22 {strides = array<i32>} : memref<16x128xbf16, #tpu.memory_space<vmem>>, vector<16x128xbf16>,
    return
  }
  func.func @transform_0(%arg0: i32, %arg1: i32) -> (i32, i32) {
    %c0_i32 = arith.constant 0 : i32
    %c0_i32_0 = arith.constant 0 : i32
    return %arg0, %c0_i32 : i32, i32
  }
  func.func @transform_1(%arg0: i32, %arg1: i32) -> (i32, i32) {
    %c0_i32 = arith.constant 0 : i32
    %c0_i32_0 = arith.constant 0 : i32
    %c0_i32_1 = arith.constant 0 : i32
    return %c0_i32, %c0_i32_0 : i32, i32
  }
  func.func @transform_2(%arg0: i32, %arg1: i32) -> (i32, i32) {
    %c0_i32 = arith.constant 0 : i32
    %c0_i32_0 = arith.constant 0 : i32
    %c0_i32_1 = arith.constant 0 : i32
    return %c0_i32, %c0_i32_0 : i32, i32
  }
  func.func @transform_3(%arg0: i32, %arg1: i32) -> (i32, i32) {
    %c0_i32 = arith.constant 0 : i32
    %c0_i32_0 = arith.constant 0 : i32
    return %c0_i32, %arg1 : i32, i32
  }
  func.func @transform_4(%arg0: i32, %arg1: i32) -> (i32, i32) {
    %c0_i32 = arith.constant 0 : i32
    %c0_i32_0 = arith.constant 0 : i32
    return %c0_i32, %arg1 : i32, i32
  }
  func.func @transform_5(%arg0: i32, %arg1: i32) -> (i32, i32) {
    %c0_i32 = arith.constant 0 : i32
    return %arg0, %arg1 : i32, i32
  }
}

module attributes {stable_mosaic.version = 11 : i64} {
  func.func @kernel(%arg0: i32, %arg1: i32, %arg2: i32, %arg3: memref<16x128xbf16, #tpu.memory_space<vmem>>, %arg4: memref<128x32xbf16, #tpu.memory_space<vmem>>, %arg5: memref<1x32xf32, #tpu.memory_space<vmem>>, %arg6: memref<16x32xf32, #tpu.memory_space<vmem>>, %arg7: memref<16x32xf32, #tpu.memory_space<vmem>>, %arg8: memref<16x32xf32, #tpu.memory_space<vmem>>) attributes {dimension_semantics = [#tpu.dimension_semantics<parallel>, #tpu.dimension_semantics<parallel>, #tpu.dimension_semantics<arbitrary>], iteration_bounds = array<i64: 1, 1, 1>, scalar_prefetch = 0 : i64, scratch_operands = 1 : i64, tpu.core_type = #tpu.core_type<tc>, window_params = [{transform_indices = @transform_0, window_bounds = array<i64: 16, 128>}, {transform_indices = @transform_1, window_bounds = array<i64: 128, 32>}, {transform_indices = @transform_2, window_bounds = array<i64: 1, 32>}, {transform_indices = @transform_3, window_bounds = array<i64: 16, 32>}, {transform_indices = @transform_4, window_bounds = array<i64: 16, 32>}]} {
    %c0_i32 = arith.constant 0 : i32
    %0 = arith.cmpi eq, %arg2, %c0_i32 : i32
    %1 = arith.extui %0 : i1 to i32
    %c0_i32_0 = arith.constant 0 : i32
    %2 = arith.cmpi ne, %1, %c0_i32_0 : i32
    scf.if %2 {
      %cst_10 = arith.constant 0.000000e+00 : f32
      %12 = vector.broadcast %cst_10 : f32 to vector<16x32xf32>
      %c0_11 = arith.constant 0 : index
      %c0_12 = arith.constant 0 : index
      %13 = vector.load %arg8[%c0_11, %c0_12] : memref<16x32xf32, #tpu.memory_space<vmem>>, vector<16x32xf32>
      tpu.vector_store %arg8[%c0_11, %c0_12], %12 {strides = array<i32>} : memref<16x32xf32, #tpu.memory_space<vmem>>, vector<16x32xf32>,
    } else {
    }
    %c0 = arith.constant 0 : index
    %c0_1 = arith.constant 0 : index
    %3 = vector.load %arg8[%c0, %c0_1] : memref<16x32xf32, #tpu.memory_space<vmem>>, vector<16x32xf32>
    %c0_2 = arith.constant 0 : index
    %c0_3 = arith.constant 0 : index
    %4 = vector.load %arg3[%c0_2, %c0_3] : memref<16x128xbf16, #tpu.memory_space<vmem>>, vector<16x128xbf16>
    %c0_4 = arith.constant 0 : index
    %c0_5 = arith.constant 0 : index
    %5 = vector.load %arg4[%c0_4, %c0_5] : memref<128x32xbf16, #tpu.memory_space<vmem>>, vector<128x32xbf16>
    %cst = arith.constant dense<0.000000e+00> : vector<16x32xf32>
    %6 = tpu.matmul %4, %5, %cst {dimension_numbers = #tpu.dot_dimension_numbers<[1], [0], [0], [1], [0, 0, 1, 1], [], []>} : vector<16x128xbf16>, vector<128x32xbf16>, vector<16x32xf32> -> vector<16x32xf32>
    %7 = arith.addf %3, %6 : vector<16x32xf32>
    %c0_6 = arith.constant 0 : index
    %c0_7 = arith.constant 0 : index
    %8 = vector.load %arg8[%c0_6, %c0_7] : memref<16x32xf32, #tpu.memory_space<vmem>>, vector<16x32xf32>
    tpu.vector_store %arg8[%c0_6, %c0_7], %7 {strides = array<i32>} : memref<16x32xf32, #tpu.memory_space<vmem>>, vector<16x32xf32>,
    %c0_i32_8 = arith.constant 0 : i32
    %9 = arith.cmpi eq, %arg2, %c0_i32_8 : i32
    %10 = arith.extui %9 : i1 to i32
    %c0_i32_9 = arith.constant 0 : i32
    %11 = arith.cmpi ne, %10, %c0_i32_9 : i32
    scf.if %11 {
      %c0_10 = arith.constant 0 : index
      %c0_11 = arith.constant 0 : index
      %12 = vector.load %arg8[%c0_10, %c0_11] : memref<16x32xf32, #tpu.memory_space<vmem>>, vector<16x32xf32>
      %c0_12 = arith.constant 0 : index
      %c0_13 = arith.constant 0 : index
      %13 = vector.load %arg5[%c0_12, %c0_13] : memref<1x32xf32, #tpu.memory_space<vmem>>, vector<1x32xf32>
      %14 = vector.broadcast %13 : vector<1x32xf32> to vector<16x32xf32>
      %15 = arith.addf %12, %14 : vector<16x32xf32>
      %c0_14 = arith.constant 0 : index
      %c0_15 = arith.constant 0 : index
      %16 = vector.load %arg6[%c0_14, %c0_15] : memref<16x32xf32, #tpu.memory_space<vmem>>, vector<16x32xf32>
      %17 = arith.addf %15, %16 : vector<16x32xf32>
      %c0_16 = arith.constant 0 : index
      %c0_17 = arith.constant 0 : index
      %18 = vector.load %arg7[%c0_16, %c0_17] : memref<16x32xf32, #tpu.memory_space<vmem>>, vector<16x32xf32>
      tpu.vector_store %arg7[%c0_16, %c0_17], %17 {strides = array<i32>} : memref<16x32xf32, #tpu.memory_space<vmem>>, vector<16x32xf32>,
    } else {
    }
    return
  }
  func.func @transform_0(%arg0: i32, %arg1: i32, %arg2: i32) -> (i32, i32) {
    %c0_i32 = arith.constant 0 : i32
    return %arg0, %arg2 : i32, i32
  }
  func.func @transform_1(%arg0: i32, %arg1: i32, %arg2: i32) -> (i32, i32) {
    %c0_i32 = arith.constant 0 : i32
    return %arg2, %arg1 : i32, i32
  }
  func.func @transform_2(%arg0: i32, %arg1: i32, %arg2: i32) -> (i32, i32) {
    %c0_i32 = arith.constant 0 : i32
    %c0_i32_0 = arith.constant 0 : i32
    return %c0_i32, %arg1 : i32, i32
  }
  func.func @transform_3(%arg0: i32, %arg1: i32, %arg2: i32) -> (i32, i32) {
    %c0_i32 = arith.constant 0 : i32
    return %arg0, %arg1 : i32, i32
  }
  func.func @transform_4(%arg0: i32, %arg1: i32, %arg2: i32) -> (i32, i32) {
    %c0_i32 = arith.constant 0 : i32
    return %arg0, %arg1 : i32, i32
  }
}

module attributes {stable_mosaic.version = 11 : i64} {
  func.func @kernel(%arg0: i32, %arg1: i32, %arg2: memref<2x128xf32, #tpu.memory_space<vmem>>, %arg3: memref<3x128xf32, #tpu.memory_space<vmem>>, %arg4: memref<1x2x3xf32, #tpu.memory_space<vmem>>, %arg5: memref<2x3xf32, #tpu.memory_space<vmem>>) attributes {dimension_semantics = [#tpu.dimension_semantics<parallel>, #tpu.dimension_semantics<arbitrary>], iteration_bounds = array<i64: 2, 1>, scalar_prefetch = 0 : i64, scratch_operands = 1 : i64, tpu.core_type = #tpu.core_type<tc>, window_params = [{transform_indices = @transform_0, window_bounds = array<i64: 2, 128>}, {transform_indices = @transform_1, window_bounds = array<i64: 3, 128>}, {transform_indices = @transform_2, window_bounds = array<i64: 1, 2, 3>}]} {
    %c0_i32 = arith.constant 0 : i32
    %0 = arith.cmpi eq, %arg1, %c0_i32 : i32
    %1 = arith.extui %0 : i1 to i32
    %c0_i32_0 = arith.constant 0 : i32
    %2 = arith.cmpi ne, %1, %c0_i32_0 : i32
    scf.if %2 {
      %cst_10 = arith.constant 0.000000e+00 : f32
      %12 = vector.broadcast %cst_10 : f32 to vector<2x3xf32>
      %c0_11 = arith.constant 0 : index
      %c0_12 = arith.constant 0 : index
      %13 = vector.load %arg5[%c0_11, %c0_12] : memref<2x3xf32, #tpu.memory_space<vmem>>, vector<2x3xf32>
      tpu.vector_store %arg5[%c0_11, %c0_12], %12 {strides = array<i32>} : memref<2x3xf32, #tpu.memory_space<vmem>>, vector<2x3xf32>,
    } else {
    }
    %c0 = arith.constant 0 : index
    %c0_1 = arith.constant 0 : index
    %3 = vector.load %arg5[%c0, %c0_1] : memref<2x3xf32, #tpu.memory_space<vmem>>, vector<2x3xf32>
    %c0_2 = arith.constant 0 : index
    %c0_3 = arith.constant 0 : index
    %4 = vector.load %arg2[%c0_2, %c0_3] : memref<2x128xf32, #tpu.memory_space<vmem>>, vector<2x128xf32>
    %c0_4 = arith.constant 0 : index
    %c0_5 = arith.constant 0 : index
    %5 = vector.load %arg3[%c0_4, %c0_5] : memref<3x128xf32, #tpu.memory_space<vmem>>, vector<3x128xf32>
    %cst = arith.constant dense<0.000000e+00> : vector<2x3xf32>
    %6 = tpu.matmul %4, %5, %cst {dimension_numbers = #tpu.dot_dimension_numbers<[1], [1], [0], [0], [0, 0, 1, 0], [], []>} : vector<2x128xf32>, vector<3x128xf32>, vector<2x3xf32> -> vector<2x3xf32>
    %7 = arith.addf %3, %6 : vector<2x3xf32>
    %c0_6 = arith.constant 0 : index
    %c0_7 = arith.constant 0 : index
    %8 = vector.load %arg5[%c0_6, %c0_7] : memref<2x3xf32, #tpu.memory_space<vmem>>, vector<2x3xf32>
    tpu.vector_store %arg5[%c0_6, %c0_7], %7 {strides = array<i32>} : memref<2x3xf32, #tpu.memory_space<vmem>>, vector<2x3xf32>,
    %c0_i32_8 = arith.constant 0 : i32
    %9 = arith.cmpi eq, %arg1, %c0_i32_8 : i32
    %10 = arith.extui %9 : i1 to i32
    %c0_i32_9 = arith.constant 0 : i32
    %11 = arith.cmpi ne, %10, %c0_i32_9 : i32
    scf.if %11 {
      %c0_10 = arith.constant 0 : index
      %c0_11 = arith.constant 0 : index
      %12 = vector.load %arg5[%c0_10, %c0_11] : memref<2x3xf32, #tpu.memory_space<vmem>>, vector<2x3xf32>
      %c0_12 = arith.constant 0 : index
      %c0_13 = arith.constant 0 : index
      %c0_14 = arith.constant 0 : index
      %13 = vector.load %arg4[%c0_12, %c0_13, %c0_14] : memref<1x2x3xf32, #tpu.memory_space<vmem>>, vector<1x2x3xf32>
      %14 = vector.shape_cast %13 : vector<1x2x3xf32> to vector<2x3xf32>
      %15 = vector.shape_cast %12 : vector<2x3xf32> to vector<1x2x3xf32>
      tpu.vector_store %arg4[%c0_12, %c0_13, %c0_14], %15 {strides = array<i32>} : memref<1x2x3xf32, #tpu.memory_space<vmem>>, vector<1x2x3xf32>,
    } else {
    }
    return
  }
  func.func @transform_0(%arg0: i32, %arg1: i32) -> (i32, i32) {
    %c1_i32 = arith.constant 1 : i32
    %0 = arith.muli %arg0, %c1_i32 : i32
    %1 = arith.addi %0, %arg1 : i32
    %c0_i32 = arith.constant 0 : i32
    %c0_i32_0 = arith.constant 0 : i32
    return %c0_i32, %1 : i32, i32
  }
  func.func @transform_1(%arg0: i32, %arg1: i32) -> (i32, i32) {
    %c1_i32 = arith.constant 1 : i32
    %0 = arith.muli %arg0, %c1_i32 : i32
    %1 = arith.addi %0, %arg1 : i32
    %c0_i32 = arith.constant 0 : i32
    %c0_i32_0 = arith.constant 0 : i32
    return %c0_i32, %1 : i32, i32
  }
  func.func @transform_2(%arg0: i32, %arg1: i32) -> (i32, i32, i32) {
    %c0_i32 = arith.constant 0 : i32
    %c0_i32_0 = arith.constant 0 : i32
    %c0_i32_1 = arith.constant 0 : i32
    return %arg0, %c0_i32, %c0_i32_0 : i32, i32, i32
  }
}

module attributes {stable_mosaic.version = 11 : i64} {
  func.func @_layernorm_kernel(%arg0: i32, %arg1: memref<16x32xf32, #tpu.memory_space<vmem>>, %arg2: memref<1x32xf32, #tpu.memory_space<vmem>>, %arg3: memref<1x32xf32, #tpu.memory_space<vmem>>, %arg4: memref<16x32xf32, #tpu.memory_space<vmem>>) attributes {dimension_semantics = [#tpu.dimension_semantics<parallel>], iteration_bounds = array<i64: 1>, scalar_prefetch = 0 : i64, scratch_operands = 0 : i64, tpu.core_type = #tpu.core_type<tc>, window_params = [{transform_indices = @transform_0, window_bounds = array<i64: 16, 32>}, {pipeline_mode = #tpu.pipeline_mode<synchronous>, transform_indices = @transform_1, window_bounds = array<i64: 1, 32>}, {pipeline_mode = #tpu.pipeline_mode<synchronous>, transform_indices = @transform_2, window_bounds = array<i64: 1, 32>}, {transform_indices = @transform_3, window_bounds = array<i64: 16, 32>}]} {
    %c0 = arith.constant 0 : index
    %c0_0 = arith.constant 0 : index
    %0 = vector.load %arg1[%c0, %c0_0] : memref<16x32xf32, #tpu.memory_space<vmem>>, vector<16x32xf32>
    %cst = arith.constant dense<0.000000e+00> : vector<16xf32>
    %1 = vector.multi_reduction <add>, %0, %cst [1] : vector<16x32xf32> to vector<16xf32>
    %2 = vector.shape_cast %1 : vector<16xf32> to vector<16x1xf32>
    %cst_1 = arith.constant 3.200000e+01 : f32
    %3 = vector.broadcast %cst_1 : f32 to vector<16x1xf32>
    %4 = arith.divf %2, %3 : vector<16x1xf32>
    %5 = vector.broadcast %4 : vector<16x1xf32> to vector<16x32xf32>
    %6 = arith.subf %0, %5 : vector<16x32xf32>
    %7 = arith.mulf %6, %6 : vector<16x32xf32>
    %cst_2 = arith.constant dense<0.000000e+00> : vector<16xf32>
    %8 = vector.multi_reduction <add>, %7, %cst_2 [1] : vector<16x32xf32> to vector<16xf32>
    %9 = vector.shape_cast %8 : vector<16xf32> to vector<16x1xf32>
    %cst_3 = arith.constant 3.200000e+01 : f32
    %10 = vector.broadcast %cst_3 : f32 to vector<16x1xf32>
    %11 = arith.divf %9, %10 : vector<16x1xf32>
    %cst_4 = arith.constant 9.99999974E-6 : f32
    %12 = vector.broadcast %cst_4 : f32 to vector<16x1xf32>
    %13 = arith.addf %11, %12 : vector<16x1xf32>
    %14 = math.rsqrt %13 : vector<16x1xf32>
    %15 = vector.broadcast %14 : vector<16x1xf32> to vector<16x32xf32>
    %16 = arith.mulf %6, %15 : vector<16x32xf32>
    %c0_5 = arith.constant 0 : index
    %c0_6 = arith.constant 0 : index
    %17 = vector.load %arg2[%c0_5, %c0_6] : memref<1x32xf32, #tpu.memory_space<vmem>>, vector<1x32xf32>
    %18 = vector.broadcast %17 : vector<1x32xf32> to vector<16x32xf32>
    %19 = arith.mulf %16, %18 : vector<16x32xf32>
    %c0_7 = arith.constant 0 : index
    %c0_8 = arith.constant 0 : index
    %20 = vector.load %arg3[%c0_7, %c0_8] : memref<1x32xf32, #tpu.memory_space<vmem>>, vector<1x32xf32>
    %21 = vector.broadcast %20 : vector<1x32xf32> to vector<16x32xf32>
    %22 = arith.addf %19, %21 : vector<16x32xf32>
    %c0_9 = arith.constant 0 : index
    %c0_10 = arith.constant 0 : index
    %23 = vector.load %arg4[%c0_9, %c0_10] : memref<16x32xf32, #tpu.memory_space<vmem>>, vector<16x32xf32>
    tpu.vector_store %arg4[%c0_9, %c0_10], %22 {strides = array<i32>} : memref<16x32xf32, #tpu.memory_space<vmem>>, vector<16x32xf32>,
    return
  }
  func.func @transform_0(%arg0: i32) -> (i32, i32) {
    %c0_i32 = arith.constant 0 : i32
    %c0_i32_0 = arith.constant 0 : i32
    return %arg0, %c0_i32 : i32, i32
  }
  func.func @transform_1(%arg0: i32) -> (i32, i32) {
    %c0_i32 = arith.constant 0 : i32
    %c0_i32_0 = arith.constant 0 : i32
    %c0_i32_1 = arith.constant 0 : i32
    return %c0_i32, %c0_i32_0 : i32, i32
  }
  func.func @transform_2(%arg0: i32) -> (i32, i32) {
    %c0_i32 = arith.constant 0 : i32
    %c0_i32_0 = arith.constant 0 : i32
    %c0_i32_1 = arith.constant 0 : i32
    return %c0_i32, %c0_i32_0 : i32, i32
  }
  func.func @transform_3(%arg0: i32) -> (i32, i32) {
    %c0_i32 = arith.constant 0 : i32
    %c0_i32_0 = arith.constant 0 : i32
    return %arg0, %c0_i32 : i32, i32
  }
}

</mosaic_0001>

<bundles_post_ra>
// kernel: gpt2_classifier_forward.13
= control target key start
LH: loop header
LB: loop body
LE: loop exit
PB: predicated region body
PF: predicated region fallthrough
CT: control target
= control target key end

     0   :  { %s661_s9 = smov 0   ;;  %s663_s10 = smov 0   ;;  %s737_s0 = inlined_call_operand.vmem [shape: bf16[2,8,96], index: 0, kind: input, shape index: {}]   ;;  %s738_s1 = inlined_call_operand.vmem [shape: f32[2,1,8], index: 1, kind: input, shape index: {}]   ;;  %s739_s2 = inlined_call_operand.vmem [shape: bf16[2,8,32], index: 2, kind: output, shape index: {}]  }
   0x1   :  { %s665_s11 = smov 0  }
   0x2 LB: > { %s24_s12 = sadd.s32 1, %s632_s10  ;;  %p526_p0 = scmp.ge.s32.totalorder %s636_s11, 1  ;;  %s636_s11 = sphi %s665_s11, %s12_s11   ;;  %s632_s10 = sphi %s663_s10, %s741_s10   ;;  %s628_s9 = sphi %s661_s9, %s740_s9  }
   0x3   : > { %p26_p1 = scmp.ge.s32.totalorder %s24_s12, 2  ;;  %p138_p2 = scmp.lt.s32.totalorder %s636_s11, 3 }
   0x5   : > { %s743_s12 = smov (%p26_p1, %s24_s12), 0  ;;  %p139_p3 = pnand %p526_p0, %p138_p2 }
   0x6   : > { %p167_p4 = scmp.lt.s32.totalorder (!%p139_p3), %s628_s9, 1  ;;  %s640_s17 = smov (!%p139_p3), 96  }
   0x7   : > { %142 = sbr.rel (%p139_p3) target bundleno = 1478 (0x5c6), region = 28  ;;  %s641_s18 = smov (!%p139_p3), 64  }
   0x8   : > { %s642_s22 = smov (!%p139_p3), 80   ;;  %s643_s23 = smov (!%p139_p3), 112  }
   0x9   : > { %s644_s27 = smov (!%p139_p3), 48   ;;  %s645_s28 = smov (!%p139_p3), 16  }
   0xc   : > { %v638_v0 = vmov 0.0   ;;  %vm639_vm0 = vmmov 0   ;;  %s745_s9 = smov (!%p167_p4, %s628_s9), 1  ;;  %vm204_vm1 = vcmask 130048   ;;  %v186_v5 = vlaneseq }
   0xd   : > { %548 = vmatprep.subr.bf16.mxu0 %v638_v0  ;;  %550 = vmatprep.mubr.msk.bf16.mxu0 %vm639_vm0, %v638_v0  ;;  %s527_s13 = sshll.u32 %s745_s9, 2  ;;  %s176_s21 = scalar_lea.vmem %s738_s1, %s745_s9  ;;  %vm251_vm3 = vcmask 64512   ;;  %vm269_vm4 = vcmask 1043456   ;;  %vm314_vm5 = vcmask 125952   ;;  %vm437_vm6 = vcmask 257152  }
   0xe   : > { %554 = vmatprep.subr.bf16.mxu1 %v638_v0  ;;  %556 = vmatprep.mubr.msk.bf16.mxu1 %vm639_vm0, %v638_v0  ;;  %s693_s16 = scalar_lea.vmem %s737_s0, %s527_s13  ;;  %v187_v6 = vshrl.u32 %v186_v5, 7  ;;  %v189_v7 = vand.u32 127, %v186_v5  ;;  %v529_v8 = vld [vmem:[%s176_s21] ss:$0 sm:$0xff]  ;;  %s720_s26 = scalar_lea.vmem %s739_s2, %s527_s13 }
   0xf   : > { %v198_v1 = vld [vmem:[%s693_s16] sm:$0xf] }
  0x10   : > { %v530_v2 = vcombine.low %v198_v1, %v198_v1  ;;  %vm190_vm2 = vcmp.le.s32.totalorder %v189_v7, %v187_v6  ;;  %v605_v23 = vld [vmem:[%s693_s16] ss:$0 sps:$4 sm:$0xff]  }
  0x11   : > { %v197_v9 = vsel %vm190_vm2, %v529_v8, -1e+09 }
  0x12   : > { %202 = vrot.lane.b32.xlu0 %v530_v2, %s640_s17  ;;  %264 = vrot.lane.b32.xlu1 %v530_v2, %s641_s18 }
  0x84   : > { %v203_v3 = vpop.permute.xlu0 %202  ;;  %v265_v16 = vpop.permute.xlu1 %264 }
  0x85   : > { %v209_v4 = vsel %vm204_vm1, %v203_v3, 0  ;;  %v271_v17 = vsel %vm269_vm4, %v265_v16, 0 }
  0x86   : > { %549 = vmatpush3.bf16.xpose.msra.mxu0 %v209_v4  ;;  %555 = vmatpush3.bf16.msra.mxu1 %v271_v17 }
  0x87   : > { %566 = vmatprep.subr.bf16.mxu0 %v638_v0  ;;  %560 = vmatprep.subr.bf16.mxu1 %v638_v0 }
  0x8d   : > { %551 = vmatmul.mubr.msk.bf16.vlgmr.msra.gmra.mxu0 %vm204_vm1, %v198_v1 }
  0x8e   : > { %568 = vmatprep.mubr.msk.bf16.mxu0 %vm639_vm0, %v638_v0 }
 0x14d   : > { %v245_v10 = vpop.f32.mrf.mxu0 }
 0x14e   : > { %v246_v11 = vadd.f32 %v245_v10, %v197_v9 }
 0x14f   : > { %v552_v12 = vpop.f32.mrf.mxu0 }
 0x150   : > { %v252_v13 = vsel %vm251_vm3, %v246_v11, -inf }
 0x151   : > { %253 = vmax.xlane.f32.xlu0 %v252_v13  ;;  %v248_v14 = vpop.f32.mrf.mxu0 }
 0x153   : > { %v553_v15 = vpop.f32.mrf.mxu0 }
 0x1da   : > { %v254_v18 = vpop.xlane.xlu0 %253 }
 0x1db   : > { %v255_v19 = vsub.f32 %v246_v11, %v254_v18 }
 0x1dd   : > { %v256_v20 = vmul.f32 1.442695, %v255_v19 }
 0x1df   : > { %606 = vpow2.f32 %v256_v20 }
 0x1ec   : > { %v607_v21 = vpop.eup %606 }
 0x1ed   : > { %v258_v22 = vsel %vm251_vm3, %v607_v21, 0.0 }
 0x1ee   : > { %259 = vadd.xlane.f32.xlu1 %v258_v22 }
 0x1ff   : > { %322 = vrot.lane.b32.xlu1 %v605_v23, %s642_s22 }
 0x203   : > { %320 = vrot.lane.b32.xlu1 %v605_v23, %s643_s23 }
 0x277   : > { %v260_v24 = vpop.xlane.xlu1 %259 }
 0x278   : > { %608 = vrcp.f32 %v260_v24 }
 0x27b   : > { %v323_v26 = vpop.permute.xlu1 %322 }
 0x27c   : > { %v328_v28 = vsel %vm204_vm1, %v323_v26, 0 }
 0x27f   : > { %v321_v30 = vpop.permute.xlu1 %320 }
 0x285   : > { %v609_v25 = vpop.eup %608 }
 0x286   : > { %v262_v27 = vmul.f32 %v609_v25, %v607_v21 }
 0x288   : > { %v263_v29 = vpack.c.bf16 %v262_v27, %v262_v27 }
 0x28a   : > { %557 = vmatmul.mubr.msk.bf16.vlgmr.msra.gmra.mxu1 %vm251_vm3, %v263_v29 }
 0x28b   : > { %561 = vmatpush3.bf16.xpose.msra.mxu1 %v328_v28  ;;  %562 = vmatprep.mubr.msk.bf16.mxu1 %vm639_vm0, %v638_v0 }
 0x292   : > { %563 = vmatmul.mubr.msk.bf16.vlgmr.msra.gmra.mxu1 %vm204_vm1, %v321_v30 }
 0x34a   : > { %v307_v31 = vpop.f32.mrf.mxu1 }
 0x34b   : > { %v313_v32 = vpack.c.bf16 %v307_v31, %v307_v31 }
 0x34c   : > { %v558_v33 = vpop.f32.mrf.mxu1 }
 0x34d   : > { %315 = vst.msk [vmem:[%s720_s26] sm:$0xf] %vm314_vm5, %v313_v32 }
 0x34e   : > { %v310_v34 = vpop.f32.mrf.mxu1 }
 0x350   : > { %v559_v35 = vpop.f32.mrf.mxu1 }
 0x352   : > { %v364_v36 = vpop.f32.mrf.mxu1 }
 0x353   : > { %v365_v37 = vadd.f32 %v364_v36, %v197_v9 }
 0x354   : > { %v564_v38 = vpop.f32.mrf.mxu1 }
 0x355   : > { %v370_v39 = vsel %vm251_vm3, %v365_v37, -inf }
 0x356   : > { %371 = vmax.xlane.f32.xlu1 %v370_v39  ;;  %v367_v40 = vpop.f32.mrf.mxu1 }
 0x358   : > { %v565_v41 = vpop.f32.mrf.mxu1 }
 0x3df   : > { %v372_v42 = vpop.xlane.xlu1 %371 }
 0x3e0   : > { %v373_v43 = vsub.f32 %v365_v37, %v372_v42 }
 0x3e2   : > { %v374_v44 = vmul.f32 1.442695, %v373_v43 }
 0x3e4   : > { %610 = vpow2.f32 %v374_v44 }
 0x3f1   : > { %v611_v45 = vpop.eup %610 }
 0x3f2   : > { %v376_v46 = vsel %vm251_vm3, %v611_v45, 0.0 }
 0x3f3   : > { %377 = vadd.xlane.f32.xlu0 %v376_v46 }
 0x409   : > { %382 = vrot.lane.b32.xlu0 %v605_v23, %s644_s27 }
 0x47c   : > { %v378_v47 = vpop.xlane.xlu0 %377 }
 0x47d   : > { %612 = vrcp.f32 %v378_v47 }
 0x480   : > { %v383_v48 = vpop.permute.xlu0 %382 }
 0x481   : > { %v388_v49 = vsel %vm269_vm4, %v383_v48, 0 }
 0x482   : > { %567 = vmatpush3.bf16.msra.mxu0 %v388_v49 }
 0x48a   : > { %v613_v50 = vpop.eup %612 }
 0x48b   : > { %v380_v51 = vmul.f32 %v613_v50, %v611_v45 }
 0x48d   : > { %v381_v52 = vpack.c.bf16 %v380_v51, %v380_v51 }
 0x48f   : > { %569 = vmatmul.mubr.msk.bf16.vlgmr.msra.gmra.mxu0 %vm251_vm3, %v381_v52 }
 0x54f   : > { %v424_v53 = vpop.f32.mrf.mxu0 }
 0x550   : > { %v539_v54 = vpack.c.bf16 %v424_v53, %v424_v53 }
 0x551   : > { %v570_v55 = vpop.f32.mrf.mxu0 }
 0x552   : > { %434 = vrot.lane.b32.xlu0 %v539_v54, %s645_s28 }
 0x553   : > { %v427_v56 = vpop.f32.mrf.mxu0 }
 0x555   : > { %v571_v57 = vpop.f32.mrf.mxu0 }
 0x5c4   : > { %v435_v58 = vpop.permute.xlu0 %434 }
 0x5c5   : > { %438 = vst.msk [vmem:[%s720_s26] sm:$0xf] %vm437_vm6, %v435_v58 }
 0x5c6 PF: > { %s12_s11 = sadd.s32 1, %s636_s11   ;;  %s740_s9 = smov %s632_s10 }
 0x5c7   : > { %p9_p5 = scmp.ge.s32.totalorder %s12_s11, 4   ;;  %s741_s10 = smov %s743_s12 }
 0x5c9   :  { %11 = sbr.rel (!%p9_p5) target bundleno = 2 (0x2), region = 61 }

// kernel: gpt2_classifier_forward.12
= control target key start
LH: loop header
LB: loop body
LE: loop exit
PB: predicated region body
PF: predicated region fallthrough
CT: control target
= control target key end

     0   :  { %vm27_vm0 = vcmask 261120   ;;  %v209_v15 = vmov 0.0   ;;  %vm210_vm1 = vmmov 0   ;;  %vm81_vm2 = vcmask 257024   ;;  %s273_s0 = inlined_call_operand.vmem [shape: f32[16,32], index: 0, kind: input, shape index: {}]   ;;  %s274_s3 = inlined_call_operand.vmem [shape: bf16[32,96], index: 3, kind: input, shape index: {}]   ;;  %s275_s1 = inlined_call_operand.vmem [shape: f32[1,32], index: 1, kind: input, shape index: {}]   ;;  %s276_s2 = inlined_call_operand.vmem [shape: f32[1,32], index: 2, kind: input, shape index: {}]   ;;  %s277_s4 = inlined_call_operand.vmem [shape: f32[1,96], index: 4, kind: input, shape index: {}]   ;;  %s278_s5 = inlined_call_operand.vmem [shape: bf16[16,96], index: 5, kind: output, shape index: {}]  }
   0x1   :  { %v25_v0 = vld [vmem:[%s273_s0] sm:$0xff]  ;;  %v26_v1 = vld [vmem:[%s273_s0 + $0x8] sm:$0xff]  ;;  %192 = vmatprep.subr.bf16.mxu0 %v209_v15  ;;  %196 = vmatprep.mubr.msk.bf16.mxu0 %vm210_vm1, %v209_v15  ;;  %vm167_vm3 = vcmask 781312  }
   0x2   :  { %v28_v2 = vsel %vm27_vm0, %v25_v0, 0.0  ;;  %v31_v3 = vsel %vm27_vm0, %v26_v1, 0.0  ;;  %v202_v14 = vld [vmem:[%s274_s3 + $0x8] sm:$0xff]   ;;  %v203_v16 = vld [vmem:[%s274_s3] sm:$0xff]  }
   0x3   :  { %29 = vadd.xlane.f32.xlu0 %v28_v2  ;;  %193 = vmatpush3.bf16.msra.mxu0 %v202_v14  ;;  %v174_v24 = vld [vmem:[%s275_s1] ss:$0 sm:$0xff] }
   0x4   :  { %194 = vmatprep.subr.bf16.mxu0 %v209_v15  ;;  %v175_v26 = vld [vmem:[%s276_s2] ss:$0 sm:$0xff] }
   0x5   :  { %v178_v36 = vld [vmem:[%s277_s4] ss:$0 sm:$0xff] }
   0x7   :  { %32 = vadd.xlane.f32.xlu0 %v31_v3  ;;  %195 = vmatpush3.bf16.msra.mxu0 %v203_v16 }
  0x8c   :  { %v30_v4 = vpop.xlane.xlu0 %29 }
  0x8d   :  { %v35_v5 = vmul.f32 0.03125, %v30_v4 }
  0x8f   :  { %v37_v6 = vsub.f32 %v25_v0, %v35_v5 }
  0x90   :  { %v33_v7 = vpop.xlane.xlu0 %32 }
  0x91   :  { %v36_v8 = vmul.f32 0.03125, %v33_v7  ;;  %v39_v9 = vmul.f32 %v37_v6, %v37_v6 }
  0x93   :  { %v38_v10 = vsub.f32 %v26_v1, %v36_v8  ;;  %v41_v11 = vsel %vm27_vm0, %v39_v9, 0.0 }
  0x94   :  { %42 = vadd.xlane.f32.xlu1 %v41_v11 }
  0x95   :  { %v40_v12 = vmul.f32 %v38_v10, %v38_v10 }
  0x97   :  { %v44_v13 = vsel %vm27_vm0, %v40_v12, 0.0 }
  0x98   :  { %45 = vadd.xlane.f32.xlu1 %v44_v13 }
 0x11d   :  { %v43_v17 = vpop.xlane.xlu1 %42 }
 0x11e   :  { %v47_v18 = vmul.f32 0.03125, %v43_v17 }
 0x120   :  { %v49_v19 = vadd.f32 1e-05, %v47_v18 }
 0x121   :  { %v46_v20 = vpop.xlane.xlu1 %45 }
 0x122   :  { %205 = vrsqrt.f32 %v49_v19  ;;  %v48_v21 = vmul.f32 0.03125, %v46_v20 }
 0x124   :  { %v50_v22 = vadd.f32 1e-05, %v48_v21 }
 0x126   :  { %207 = vrsqrt.f32 %v50_v22 }
 0x12f   :  { %v206_v23 = vpop.eup %205 }
 0x130   :  { %v53_v25 = vmul.f32 %v206_v23, %v37_v6 }
 0x132   :  { %v62_v27 = vmul.f32 %v174_v24, %v53_v25 }
 0x133   :  { %v208_v28 = vpop.eup %207 }
 0x134   :  { %v71_v29 = vadd.f32 %v175_v26, %v62_v27  ;;  %v54_v30 = vmul.f32 %v208_v28, %v38_v10 }
 0x136   :  { %v185_v31 = vpack.c.bf16 %v71_v29, %v71_v29  ;;  %v63_v32 = vmul.f32 %v174_v24, %v54_v30 }
 0x138   :  { %82 = vst.msk [vmem:[#allocation2] sm:$0xf] %vm81_vm2, %v185_v31  ;;  %v72_v33 = vadd.f32 %v175_v26, %v63_v32 }
 0x13a   :  { %v186_v34 = vpack.c.bf16 %v72_v33, %v72_v33 }
 0x13c   :  { %83 = vst.msk [vmem:[#allocation2 + $0x4] sm:$0xf] %vm81_vm2, %v186_v34 }
 0x143   :  { %v204_v35 = vld [vmem:[#allocation2] sm:$0xff]  }
 0x144   :  { %197 = vmatmul.mubr.msk.bf16.vlgmr.msra.gmra.mxu0 %vm27_vm0, %v204_v35 }
 0x204   :  { %v152_v37 = vpop.f32.mrf.mxu0 }
 0x205   :  { %v153_v38 = vadd.f32 %v178_v36, %v152_v37 }
 0x206   :  { %v198_v39 = vpop.f32.mrf.mxu0 }
 0x207   :  { %v187_v40 = vpack.c.bf16 %v153_v38, %v153_v38 }
 0x208   :  { %v155_v41 = vpop.f32.mrf.mxu0 }
 0x209   :  { %168 = vst.msk [vmem:[%s278_s5] sm:$0xf] %vm167_vm3, %v187_v40  ;;  %v156_v42 = vadd.f32 %v178_v36, %v155_v41 }
 0x20a   :  { %v199_v43 = vpop.f32.mrf.mxu0 }
 0x20b   :  { %v188_v44 = vpack.c.bf16 %v156_v42, %v156_v42 }
 0x20d   :  { %169 = vst.msk [vmem:[%s278_s5 + $0x4] sm:$0xf] %vm167_vm3, %v188_v44 }

// kernel: gpt2_classifier_forward.14
= control target key start
LH: loop header
LB: loop body
LE: loop exit
PB: predicated region body
PF: predicated region fallthrough
CT: control target
= control target key end

     0   :  { %vm22_vm0 = vcmask 261120   ;;  %v144_v0 = vmov 0.0   ;;  %vm145_vm1 = vmmov 0   ;;  %s202_s1 = inlined_call_operand.vmem [shape: bf16[32,32], index: 1, kind: input, shape index: {}]   ;;  %s203_s0 = inlined_call_operand.vmem [shape: bf16[16,32], index: 0, kind: input, shape index: {}]   ;;  %s204_s2 = inlined_call_operand.vmem [shape: f32[1,32], index: 2, kind: input, shape index: {}]   ;;  %s205_s3 = inlined_call_operand.vmem [shape: f32[16,32], index: 3, kind: input, shape index: {}]   ;;  %s206_s4 = inlined_call_operand.vmem [shape: f32[16,32], index: 4, kind: output, shape index: {}]  }
   0x1   :  { %131 = vmatprep.subr.bf16.mxu0 %v144_v0  ;;  %v141_v1 = vld [vmem:[%s202_s1 + $0x8] sm:$0xff]   ;;  %135 = vmatprep.mubr.msk.bf16.mxu0 %vm145_vm1, %v144_v0  ;;  %23 = vst.msk [vmem:[#allocation2] sm:$0xff] %vm22_vm0, %v144_v0  ;;  %24 = vst.msk [vmem:[#allocation2 + $0x8] sm:$0xff] %vm22_vm0, %v144_v0  ;;  %v142_v2 = vld [vmem:[%s202_s1] sm:$0xff]  }
   0x2   :  { %132 = vmatpush3.bf16.msra.mxu0 %v141_v1  ;;  %v143_v3 = vld [vmem:[%s203_s0] sm:$0xff]   ;;  %v114_v18 = vld [vmem:[%s205_s3 + $0x8] sm:$0xff] }
   0x3   :  { %133 = vmatprep.subr.bf16.mxu0 %v144_v0  ;;  %v127_v12 = vld [vmem:[%s204_s2] ss:$0 sm:$0xff] }
   0x4   :  { %v113_v14 = vld [vmem:[%s205_s3] sm:$0xff] }
   0x6   :  { %134 = vmatpush3.bf16.msra.mxu0 %v142_v2 }
   0x8   :  { %v25_v4 = vld [vmem:[#allocation2] sm:$0xff]  ;;  %v26_v8 = vld [vmem:[#allocation2 + $0x8] sm:$0xff] }
   0x9   :  { %136 = vmatmul.mubr.msk.bf16.vlgmr.msra.gmra.mxu0 %vm22_vm0, %v143_v3 }
  0xc9   :  { %v88_v5 = vpop.f32.mrf.mxu0 }
  0xca   :  { %v95_v6 = vadd.f32 %v88_v5, %v25_v4 }
  0xcb   :  { %v137_v7 = vpop.f32.mrf.mxu0 }
  0xcc   :  { %97 = vst.msk [vmem:[#allocation2] sm:$0xff] %vm22_vm0, %v95_v6 }
  0xcd   :  { %v91_v9 = vpop.f32.mrf.mxu0 }
  0xce   :  { %v96_v10 = vadd.f32 %v91_v9, %v26_v8 }
  0xcf   :  { %v138_v11 = vpop.f32.mrf.mxu0 }
  0xd0   :  { %98 = vst.msk [vmem:[#allocation2 + $0x8] sm:$0xff] %vm22_vm0, %v96_v10 }
  0xd3   :  { %v102_v13 = vld [vmem:[#allocation2] sm:$0xff] }
  0xd4   :  { %v111_v15 = vadd.f32 %v127_v12, %v102_v13 }
  0xd6   :  { %v115_v16 = vadd.f32 %v113_v14, %v111_v15 }
  0xd7   :  { %v103_v17 = vld [vmem:[#allocation2 + $0x8] sm:$0xff] }
  0xd8   :  { %117 = vst.msk [vmem:[%s206_s4] sm:$0xff] %vm22_vm0, %v115_v16  ;;  %v112_v19 = vadd.f32 %v127_v12, %v103_v17 }
  0xda   :  { %v116_v20 = vadd.f32 %v114_v18, %v112_v19 }
  0xdc   :  { %118 = vst.msk [vmem:[%s206_s4 + $0x8] sm:$0xff] %vm22_vm0, %v116_v20 }

// kernel: gpt2_classifier_forward.15
= control target key start
LH: loop header
LB: loop body
LE: loop exit
PB: predicated region body
PF: predicated region fallthrough
CT: control target
= control target key end

     0   :  { %vm27_vm0 = vcmask 261120   ;;  %v235_v15 = vmov 0.0   ;;  %vm236_vm1 = vmmov 0   ;;  %vm81_vm2 = vcmask 257024   ;;  %s296_s0 = inlined_call_operand.vmem [shape: f32[16,32], index: 0, kind: input, shape index: {}]   ;;  %s297_s3 = inlined_call_operand.vmem [shape: bf16[32,128], index: 3, kind: input, shape index: {}]   ;;  %s298_s1 = inlined_call_operand.vmem [shape: f32[1,32], index: 1, kind: input, shape index: {}]   ;;  %s299_s2 = inlined_call_operand.vmem [shape: f32[1,32], index: 2, kind: input, shape index: {}]   ;;  %s300_s4 = inlined_call_operand.vmem [shape: f32[1,128], index: 4, kind: input, shape index: {}]   ;;  %s301_s5 = inlined_call_operand.vmem [shape: bf16[16,128], index: 5, kind: output, shape index: {}]  }
   0x1   :  { %v25_v0 = vld [vmem:[%s296_s0] sm:$0xff]  ;;  %v26_v1 = vld [vmem:[%s296_s0 + $0x8] sm:$0xff]  ;;  %214 = vmatprep.subr.bf16.mxu0 %v235_v15  ;;  %218 = vmatprep.mubr.msk.bf16.mxu0 %vm236_vm1, %v235_v15 }
   0x2   :  { %v28_v2 = vsel %vm27_vm0, %v25_v0, 0.0  ;;  %v31_v3 = vsel %vm27_vm0, %v26_v1, 0.0  ;;  %v224_v14 = vld [vmem:[%s297_s3 + $0x8] sm:$0xff]   ;;  %v225_v16 = vld [vmem:[%s297_s3] sm:$0xff]  }
   0x3   :  { %29 = vadd.xlane.f32.xlu0 %v28_v2  ;;  %215 = vmatpush3.bf16.msra.mxu0 %v224_v14  ;;  %v191_v24 = vld [vmem:[%s298_s1] ss:$0 sm:$0xff] }
   0x4   :  { %216 = vmatprep.subr.bf16.mxu0 %v235_v15  ;;  %v192_v26 = vld [vmem:[%s299_s2] ss:$0 sm:$0xff] }
   0x5   :  { %v195_v36 = vld [vmem:[%s300_s4] ss:$0 sm:$0xff] }
   0x7   :  { %32 = vadd.xlane.f32.xlu0 %v31_v3  ;;  %217 = vmatpush3.bf16.msra.mxu0 %v225_v16 }
  0x8c   :  { %v30_v4 = vpop.xlane.xlu0 %29 }
  0x8d   :  { %v35_v5 = vmul.f32 0.03125, %v30_v4 }
  0x8f   :  { %v37_v6 = vsub.f32 %v25_v0, %v35_v5 }
  0x90   :  { %v33_v7 = vpop.xlane.xlu0 %32 }
  0x91   :  { %v36_v8 = vmul.f32 0.03125, %v33_v7  ;;  %v39_v9 = vmul.f32 %v37_v6, %v37_v6 }
  0x93   :  { %v38_v10 = vsub.f32 %v26_v1, %v36_v8  ;;  %v41_v11 = vsel %vm27_vm0, %v39_v9, 0.0 }
  0x94   :  { %42 = vadd.xlane.f32.xlu1 %v41_v11 }
  0x95   :  { %v40_v12 = vmul.f32 %v38_v10, %v38_v10 }
  0x97   :  { %v44_v13 = vsel %vm27_vm0, %v40_v12, 0.0 }
  0x98   :  { %45 = vadd.xlane.f32.xlu1 %v44_v13 }
 0x11d   :  { %v43_v17 = vpop.xlane.xlu1 %42 }
 0x11e   :  { %v47_v18 = vmul.f32 0.03125, %v43_v17 }
 0x120   :  { %v49_v19 = vadd.f32 1e-05, %v47_v18 }
 0x121   :  { %v46_v20 = vpop.xlane.xlu1 %45 }
 0x122   :  { %227 = vrsqrt.f32 %v49_v19  ;;  %v48_v21 = vmul.f32 0.03125, %v46_v20 }
 0x124   :  { %v50_v22 = vadd.f32 1e-05, %v48_v21 }
 0x126   :  { %229 = vrsqrt.f32 %v50_v22 }
 0x12f   :  { %v228_v23 = vpop.eup %227 }
 0x130   :  { %v53_v25 = vmul.f32 %v228_v23, %v37_v6 }
 0x132   :  { %v62_v27 = vmul.f32 %v191_v24, %v53_v25 }
 0x133   :  { %v230_v28 = vpop.eup %229 }
 0x134   :  { %v71_v29 = vadd.f32 %v192_v26, %v62_v27  ;;  %v54_v30 = vmul.f32 %v230_v28, %v38_v10 }
 0x136   :  { %v202_v31 = vpack.c.bf16 %v71_v29, %v71_v29  ;;  %v63_v32 = vmul.f32 %v191_v24, %v54_v30 }
 0x138   :  { %82 = vst.msk [vmem:[#allocation2] sm:$0xf] %vm81_vm2, %v202_v31  ;;  %v72_v33 = vadd.f32 %v192_v26, %v63_v32 }
 0x13a   :  { %v203_v34 = vpack.c.bf16 %v72_v33, %v72_v33 }
 0x13c   :  { %83 = vst.msk [vmem:[#allocation2 + $0x4] sm:$0xf] %vm81_vm2, %v203_v34 }
 0x143   :  { %v226_v35 = vld [vmem:[#allocation2] sm:$0xff]  }
 0x144   :  { %219 = vmatmul.mubr.msk.bf16.vlgmr.msra.gmra.mxu0 %vm27_vm0, %v226_v35 }
 0x204   :  { %v152_v37 = vpop.f32.mrf.mxu0 }
 0x205   :  { %v153_v38 = vadd.f32 %v195_v36, %v152_v37 }
 0x206   :  { %v220_v39 = vpop.f32.mrf.mxu0 }
 0x207   :  { %v161_v40 = vmul.f32 0.044715, %v153_v38  ;;  %v159_v56 = vmul.f32 0.5, %v153_v38 }
 0x208   :  { %v155_v41 = vpop.f32.mrf.mxu0 }
 0x209   :  { %v163_v42 = vmul.f32 %v161_v40, %v153_v38  ;;  %v156_v43 = vadd.f32 %v195_v36, %v155_v41 }
 0x20a   :  { %v221_v44 = vpop.f32.mrf.mxu0 }
 0x20b   :  { %v165_v45 = vmul.f32 %v163_v42, %v153_v38  ;;  %v162_v46 = vmul.f32 0.044715, %v156_v43  ;;  %v160_v57 = vmul.f32 0.5, %v156_v43 }
 0x20d   :  { %v167_v47 = vadd.f32 %v165_v45, %v153_v38  ;;  %v164_v48 = vmul.f32 %v162_v46, %v156_v43 }
 0x20f   :  { %v169_v49 = vmul.f32 0.7978846, %v167_v47  ;;  %v166_v50 = vmul.f32 %v164_v48, %v156_v43 }
 0x211   :  { %231 = vtanh.f32 %v169_v49  ;;  %v168_v51 = vadd.f32 %v166_v50, %v156_v43 }
 0x213   :  { %v170_v52 = vmul.f32 0.7978846, %v168_v51 }
 0x215   :  { %233 = vtanh.f32 %v170_v52 }
 0x21e   :  { %v232_v53 = vpop.eup %231 }
 0x21f   :  { %v173_v54 = vadd.f32 1.0, %v232_v53 }
 0x221   :  { %v175_v59 = vmul.f32 %v173_v54, %v159_v56 }
 0x222   :  { %v234_v55 = vpop.eup %233 }
 0x223   :  { %v174_v58 = vadd.f32 1.0, %v234_v55 }
 0x225   :  { %v176_v60 = vmul.f32 %v174_v58, %v160_v57 }
 0x227   :  { %v209_v61 = vpack.c.bf16 %v176_v60, %v175_v59 }
 0x229   :  { %210 = vst [vmem:[%s301_s5] sm:$0xff] %v209_v61  }

// kernel: gpt2_classifier_forward.16
= control target key start
LH: loop header
LB: loop body
LE: loop exit
PB: predicated region body
PF: predicated region fallthrough
CT: control target
= control target key end

     0   :  { %vm22_vm0 = vcmask 261120   ;;  %v219_v0 = vmov 0.0   ;;  %vm220_vm1 = vmmov 0   ;;  %s294_s1 = inlined_call_operand.vmem [shape: bf16[128,32], index: 1, kind: input, shape index: {}]   ;;  %s295_s0 = inlined_call_operand.vmem [shape: bf16[16,128], index: 0, kind: input, shape index: {}]   ;;  %s296_s2 = inlined_call_operand.vmem [shape: f32[1,32], index: 2, kind: input, shape index: {}]   ;;  %s297_s3 = inlined_call_operand.vmem [shape: f32[16,32], index: 3, kind: input, shape index: {}]   ;;  %s298_s4 = inlined_call_operand.vmem [shape: f32[16,32], index: 4, kind: output, shape index: {}]  }
   0x1   :  { %188 = vmatprep.subr.bf16.mxu0 %v219_v0  ;;  %v210_v1 = vld [vmem:[%s294_s1 + $0x38] sm:$0xff]   ;;  %204 = vmatprep.mubr.msk.bf16.mxu0 %vm220_vm1, %v219_v0  ;;  %23 = vst.msk [vmem:[#allocation2] sm:$0xff] %vm22_vm0, %v219_v0  ;;  %24 = vst.msk [vmem:[#allocation2 + $0x8] sm:$0xff] %vm22_vm0, %v219_v0  ;;  %v211_v2 = vld [vmem:[%s294_s1 + $0x30] sm:$0xff]  }
   0x2   :  { %189 = vmatpush3.bf16.msra.mxu0 %v210_v1  ;;  %v212_v3 = vld [vmem:[%s294_s1 + $0x28] sm:$0xff]   ;;  %v213_v4 = vld [vmem:[%s294_s1 + $0x20] sm:$0xff]   ;;  %v214_v5 = vld [vmem:[%s294_s1 + $0x18] sm:$0xff]  }
   0x3   :  { %190 = vmatprep.subr.bf16.mxu0 %v219_v0  ;;  %v215_v6 = vld [vmem:[%s294_s1 + $0x10] sm:$0xff]   ;;  %v216_v7 = vld [vmem:[%s294_s1 + $0x8] sm:$0xff]   ;;  %v217_v8 = vld [vmem:[%s294_s1] sm:$0xff]  }
   0x4   :  { %v218_v9 = vld [vmem:[%s295_s0] sm:$0xff]   ;;  %v160_v23 = vld [vmem:[%s297_s3 + $0x8] sm:$0xff] }
   0x5   :  { %v178_v18 = vld [vmem:[%s296_s2] ss:$0 sm:$0xff] }
   0x6   :  { %191 = vmatpush3.bf16.msra.mxu0 %v211_v2  ;;  %v159_v20 = vld [vmem:[%s297_s3] sm:$0xff] }
   0x7   :  { %192 = vmatprep.subr.bf16.mxu0 %v219_v0 }
   0x8   :  { %v25_v10 = vld [vmem:[#allocation2] sm:$0xff]  ;;  %v26_v14 = vld [vmem:[#allocation2 + $0x8] sm:$0xff] }
   0xa   :  { %193 = vmatpush3.bf16.msra.mxu0 %v212_v3 }
   0xb   :  { %194 = vmatprep.subr.bf16.mxu0 %v219_v0 }
   0xe   :  { %195 = vmatpush3.bf16.msra.mxu0 %v213_v4 }
   0xf   :  { %196 = vmatprep.subr.bf16.mxu0 %v219_v0 }
  0x12   :  { %197 = vmatpush3.bf16.msra.mxu0 %v214_v5 }
  0x13   :  { %198 = vmatprep.subr.bf16.mxu0 %v219_v0 }
  0x16   :  { %199 = vmatpush3.bf16.msra.mxu0 %v215_v6 }
  0x17   :  { %200 = vmatprep.subr.bf16.mxu0 %v219_v0 }
  0x1a   :  { %201 = vmatpush3.bf16.msra.mxu0 %v216_v7 }
  0x1b   :  { %202 = vmatprep.subr.bf16.mxu0 %v219_v0 }
  0x1e   :  { %203 = vmatpush3.bf16.msra.mxu0 %v217_v8 }
  0x21   :  { %205 = vmatmul.mubr.bf16.vlgmr.msra.gmra.mxu0 %v218_v9 }
  0xe1   :  { %v133_v11 = vpop.f32.mrf.mxu0 }
  0xe2   :  { %v140_v12 = vadd.f32 %v133_v11, %v25_v10 }
  0xe3   :  { %v206_v13 = vpop.f32.mrf.mxu0 }
  0xe4   :  { %143 = vst.msk [vmem:[#allocation2] sm:$0xff] %vm22_vm0, %v140_v12 }
  0xe5   :  { %v136_v15 = vpop.f32.mrf.mxu0 }
  0xe6   :  { %v141_v16 = vadd.f32 %v136_v15, %v26_v14 }
  0xe7   :  { %v207_v17 = vpop.f32.mrf.mxu0 }
  0xe8   :  { %144 = vst.msk [vmem:[#allocation2 + $0x8] sm:$0xff] %vm22_vm0, %v141_v16 }
  0xeb   :  { %v148_v19 = vld [vmem:[#allocation2] sm:$0xff] }
  0xec   :  { %v157_v21 = vadd.f32 %v178_v18, %v148_v19 }
  0xee   :  { %v161_v22 = vadd.f32 %v159_v20, %v157_v21 }
  0xef   :  { %v149_v24 = vld [vmem:[#allocation2 + $0x8] sm:$0xff] }
  0xf0   :  { %163 = vst.msk [vmem:[%s298_s4] sm:$0xff] %vm22_vm0, %v161_v22  ;;  %v158_v25 = vadd.f32 %v178_v18, %v149_v24 }
  0xf2   :  { %v162_v26 = vadd.f32 %v160_v23, %v158_v25 }
  0xf4   :  { %164 = vst.msk [vmem:[%s298_s4 + $0x8] sm:$0xff] %vm22_vm0, %v162_v26 }

// kernel: gpt2_classifier_forward.23
= control target key start
LH: loop header
LB: loop body
LE: loop exit
PB: predicated region body
PF: predicated region fallthrough
CT: control target
= control target key end

     0   :  { %s426_s9 = smov 0   ;;  %s428_s10 = smov 0   ;;  %s465_s0 = inlined_call_operand.vmem [shape: f32[2,256], index: 0, kind: input, shape index: {}]   ;;  %s466_s1 = inlined_call_operand.vmem [shape: f32[3,256], index: 1, kind: input, shape index: {}]   ;;  %s467_s2 = inlined_call_operand.vmem [shape: f32[2,2,3], index: 2, kind: output, shape index: {}]  }
   0x1   :  { %s430_s11 = smov 0  }
   0x2 LB: > { %s24_s12 = sadd.s32 1, %s403_s10  ;;  %p346_p0 = scmp.ge.s32.totalorder %s407_s11, 1  ;;  %s407_s11 = sphi %s430_s11, %s12_s11   ;;  %s403_s10 = sphi %s428_s10, %s469_s10   ;;  %s399_s9 = sphi %s426_s9, %s468_s9  }
   0x3   : > { %p26_p1 = scmp.ge.s32.totalorder %s24_s12, 2  ;;  %p140_p2 = scmp.lt.s32.totalorder %s407_s11, 3 }
   0x5   : > { %s471_s12 = smov (%p26_p1, %s24_s12), 0  ;;  %p141_p3 = pnand %p346_p0, %p140_p2 }
   0x6   : > { %p167_p4 = scmp.lt.s32.totalorder (!%p141_p3), %s399_s9, 1 }
   0x7   : > { %144 = sbr.rel (%p141_p3) target bundleno = 223 (0xdf), region = 28 }
   0xc   : > { %vm186_vm0 = vcmask 17408   ;;  %v409_v0 = vmov 0.0   ;;  %vm410_vm1 = vmmov 0   ;;  %s473_s9 = smov (!%p167_p4, %s399_s9), 1 }
   0xd   : > { %187 = vst.msk [vmem:[#allocation2] sm:$0x3] %vm186_vm0, %v409_v0  ;;  %354 = vmatprep.subr.mxu0 %v409_v0  ;;  %356 = vmatprep.mubr.msk.f32.mxu0 %vm410_vm1, %v409_v0  ;;  %s348_s13 = sshll.u32 %s473_s9, 2  ;;  %s347_s14 = sshll.u32 %s473_s9, 1 }
   0xe   : > { %s176_s17 = scalar_lea.vmem %s466_s1, %s348_s13  ;;  %s170_s20 = scalar_lea.vmem %s465_s0, %s347_s14 }
   0xf   : > { %v190_v1 = vld [vmem:[%s176_s17] sm:$0x7]  ;;  %s181_s23 = scalar_lea.vmem %s467_s2, %s347_s14 }
  0x10   : > { %355 = vmatpush3.xpose.msra.mxu0 %v190_v1  ;;  %v189_v2 = vld [vmem:[%s170_s20] sm:$0x3] }
  0x13   : > { %357 = vmatmul.mubr.f32.vlgmr.msra.gmra.mxu0 %v189_v2 }
  0x14   : > { %v188_v3 = vld [vmem:[#allocation2] sm:$0x3] }
  0xd3   : > { %v257_v4 = vpop.f32.mrf.mxu0 }
  0xd4   : > { %v261_v5 = vadd.f32 %v257_v4, %v188_v3 }
  0xd5   : > { %v358_v6 = vpop.f32.mrf.mxu0 }
  0xd6   : > { %263 = vst.msk [vmem:[#allocation2] sm:$0x3] %vm186_vm0, %v261_v5 }
  0xdd   : > { %v267_v7 = vld [vmem:[#allocation2] sm:$0x3] }
  0xde   : > { %268 = vst.msk [vmem:[%s181_s23] sm:$0x3] %vm186_vm0, %v267_v7 }
  0xdf PF: > { %s12_s11 = sadd.s32 1, %s407_s11   ;;  %s468_s9 = smov %s403_s10 }
  0xe0   : > { %p9_p5 = scmp.ge.s32.totalorder %s12_s11, 4   ;;  %s469_s10 = smov %s471_s12 }
  0xe2   :  { %11 = sbr.rel (!%p9_p5) target bundleno = 2 (0x2), region = 69 }

// kernel: gpt2_classifier_forward.22
= control target key start
LH: loop header
LB: loop body
LE: loop exit
PB: predicated region body
PF: predicated region fallthrough
CT: control target
= control target key end

     0   :  { %vm16_vm0 = vcmask 261120   ;;  %s118_s0 = inlined_call_operand.vmem [shape: f32[16,32], index: 0, kind: input, shape index: {}]   ;;  %s119_s1 = inlined_call_operand.vmem [shape: f32[1,32], index: 1, kind: input, shape index: {}]   ;;  %s120_s2 = inlined_call_operand.vmem [shape: f32[1,32], index: 2, kind: input, shape index: {}]   ;;  %s121_s3 = inlined_call_operand.vmem [shape: f32[16,32], index: 3, kind: output, shape index: {}]  }
   0x1   :  { %v14_v0 = vld [vmem:[%s118_s0] sm:$0xff]  ;;  %v15_v1 = vld [vmem:[%s118_s0 + $0x8] sm:$0xff] }
   0x2   :  { %v17_v2 = vsel %vm16_vm0, %v14_v0, 0.0  ;;  %v20_v3 = vsel %vm16_vm0, %v15_v1, 0.0  ;;  %v68_v21 = vld [vmem:[%s119_s1] ss:$0 sm:$0xff] }
   0x3   :  { %18 = vadd.xlane.f32.xlu0 %v17_v2  ;;  %v69_v23 = vld [vmem:[%s120_s2] ss:$0 sm:$0xff] }
   0x7   :  { %21 = vadd.xlane.f32.xlu0 %v20_v3 }
  0x8c   :  { %v19_v4 = vpop.xlane.xlu0 %18 }
  0x8d   :  { %v24_v5 = vmul.f32 0.03125, %v19_v4 }
  0x8f   :  { %v26_v6 = vsub.f32 %v14_v0, %v24_v5 }
  0x90   :  { %v22_v7 = vpop.xlane.xlu0 %21 }
  0x91   :  { %v25_v8 = vmul.f32 0.03125, %v22_v7  ;;  %v28_v9 = vmul.f32 %v26_v6, %v26_v6 }
  0x93   :  { %v27_v10 = vsub.f32 %v15_v1, %v25_v8  ;;  %v30_v11 = vsel %vm16_vm0, %v28_v9, 0.0 }
  0x94   :  { %31 = vadd.xlane.f32.xlu1 %v30_v11 }
  0x95   :  { %v29_v12 = vmul.f32 %v27_v10, %v27_v10 }
  0x97   :  { %v33_v13 = vsel %vm16_vm0, %v29_v12, 0.0 }
  0x98   :  { %34 = vadd.xlane.f32.xlu1 %v33_v13 }
 0x11d   :  { %v32_v14 = vpop.xlane.xlu1 %31 }
 0x11e   :  { %v36_v15 = vmul.f32 0.03125, %v32_v14 }
 0x120   :  { %v38_v16 = vadd.f32 1e-05, %v36_v15 }
 0x121   :  { %v35_v17 = vpop.xlane.xlu1 %34 }
 0x122   :  { %70 = vrsqrt.f32 %v38_v16  ;;  %v37_v18 = vmul.f32 0.03125, %v35_v17 }
 0x124   :  { %v39_v19 = vadd.f32 1e-05, %v37_v18 }
 0x126   :  { %72 = vrsqrt.f32 %v39_v19 }
 0x12f   :  { %v71_v20 = vpop.eup %70 }
 0x130   :  { %v42_v22 = vmul.f32 %v71_v20, %v26_v6 }
 0x132   :  { %v51_v24 = vmul.f32 %v68_v21, %v42_v22 }
 0x133   :  { %v73_v25 = vpop.eup %72 }
 0x134   :  { %v60_v26 = vadd.f32 %v69_v23, %v51_v24  ;;  %v43_v27 = vmul.f32 %v73_v25, %v27_v10 }
 0x136   :  { %62 = vst.msk [vmem:[%s121_s3] sm:$0xff] %vm16_vm0, %v60_v26  ;;  %v52_v28 = vmul.f32 %v68_v21, %v43_v27 }
 0x138   :  { %v61_v29 = vadd.f32 %v69_v23, %v52_v28 }
 0x13a   :  { %63 = vst.msk [vmem:[%s121_s3 + $0x8] sm:$0xff] %vm16_vm0, %v61_v29 }

</bundles_post_ra>
